<compile_context>
chip_gen: v7x
topology: tpu7x:2x2x1
jax: 0.10.0
libtpu: 0.0.40
codegen_flags: <defaults>
</compile_context>

<pallas_src>
import jax
import jax.numpy as jnp
from jax import lax
from jax.experimental import pallas as pl
from jax.experimental.pallas import tpu as pltpu
import numpy as np


def lstm_tag_kernel(x_ref, len_ref,
                    wih0_ref, whh0_ref, b0_ref,
                    w1_ref, b1_ref,
                    wtag_ref, btag_ref,
                    out_ref,
                    gx_s, buf_s):
    """2-layer LSTM recurrence + padding(3.0) + output linear.

    x_ref    : (T, Bp, E)   f32  time-major input (batch padded to Bp)
    len_ref  : (Bp, 1)      i32  valid lengths per batch row
    wih0_ref : (E, 4H)           layer-0 input weights (pre-transposed)
    whh0_ref : (H, 4H)           layer-0 recurrent weights (pre-transposed)
    b0_ref   : (1, 4H)           bih0 + bhh0
    w1_ref   : (2H, 4H)          fused [Wih1.T ; Whh1.T]
    b1_ref   : (1, 4H)           bih1 + bhh1
    wtag_ref : (H, O), btag_ref : (1, O)
    out_ref  : (T*Bp, O)    f32  tag scores (time-major rows)
    gx_s     : (T, Bp, 4H)  VMEM scratch: hoisted layer-0 input gates
    buf_s    : (T, Bp, H)   VMEM scratch: masked (padded) lstm outputs
    """
    T, Bp, E = x_ref.shape
    H = buf_s.shape[-1]
    G = 4 * H

    # ---- hoisted layer-0 input projection: ONE big matmul, bias folded in ----
    # (T,Bp,E)->(T*Bp,E) is sublane-aligned (Bp is a multiple of 8) -> free.
    x_flat = x_ref[...].reshape(T * Bp, E)
    gx = jnp.dot(x_flat, wih0_ref[...],
                 preferred_element_type=jnp.float32) + b0_ref[...]
    gx_s[...] = gx.reshape(T, Bp, G)

    lengths = len_ref[...]                               # (Bp, 1) int32
    whh0 = whh0_ref[...]
    w1 = w1_ref[...]
    b1 = jnp.broadcast_to(b1_ref[...], (Bp, G))          # hoisted broadcast

    def gates_to_hc(gates, c):
        # Full-width transcendental passes (dense lanes), then slice i/f/g/o.
        sg = jax.nn.sigmoid(gates)                       # (Bp, 4H)
        th = jnp.tanh(gates)                             # (Bp, 4H)
        i = sg[:, 0 * H:1 * H]
        f = sg[:, 1 * H:2 * H]
        g = th[:, 2 * H:3 * H]
        o = sg[:, 3 * H:4 * H]
        c_new = f * c + i * g
        h_new = o * jnp.tanh(c_new)
        return h_new, c_new

    def step(t, carry):
        h0, c0, h1, c1 = carry
        # layer 0: only the recurrent matmul remains on the critical path
        g0 = gx_s[t] + jnp.dot(h0, whh0, preferred_element_type=jnp.float32)
        h0n, c0n = gates_to_hc(g0, c0)
        # layer 1: single fused matmul (Bp, 2H) @ (2H, 4H)
        g1 = jnp.dot(jnp.concatenate([h0n, h1], axis=-1), w1,
                     preferred_element_type=jnp.float32) + b1
        h1n, c1n = gates_to_hc(g1, c1)
        # pad_packed_sequence(padding_value=3): positions t >= length get 3.0
        buf_s[t] = jnp.where(t < lengths, h1n, jnp.float32(3.0))
        return (h0n, c0n, h1n, c1n)

    z = jnp.zeros((Bp, H), jnp.float32)
    lax.fori_loop(0, T, step, (z, z, z, z), unroll=True)

    # ---- hidden2tag on every (t, b) row, including padded (value-3) rows ----
    lin_in = buf_s[...].reshape(T * Bp, H)               # sublane-aligned, free
    out_ref[...] = (jnp.dot(lin_in, wtag_ref[...],
                            preferred_element_type=jnp.float32)
                    + btag_ref[...])


def init_params(key, embedding_dim, hidden_dim, output_size):
    """Deterministic parameter init mirroring nn.LSTM / nn.Linear shapes."""
    k = 1.0 / np.sqrt(hidden_dim)
    keys = jax.random.split(key, 11)

    def u(kk, shape):
        return jax.random.uniform(kk, shape, jnp.float32, -k, k)

    return {
        # layer 0
        "wih0": u(keys[0], (4 * hidden_dim, embedding_dim)),
        "whh0": u(keys[1], (4 * hidden_dim, hidden_dim)),
        "bih0": u(keys[2], (4 * hidden_dim,)),
        "bhh0": u(keys[3], (4 * hidden_dim,)),
        # layer 1
        "wih1": u(keys[4], (4 * hidden_dim, hidden_dim)),
        "whh1": u(keys[5], (4 * hidden_dim, hidden_dim)),
        "bih1": u(keys[6], (4 * hidden_dim,)),
        "bhh1": u(keys[7], (4 * hidden_dim,)),
        # hidden2tag
        "wtag": u(keys[8], (output_size, hidden_dim)),
        "btag": u(keys[9], (output_size,)),
    }


def prepare_kernel_params(params):
    """One-time pre-transpose / pre-fuse of weights for the kernel."""
    return {
        "wih0_t": params["wih0"].T,                                      # (E, 4H)
        "whh0_t": params["whh0"].T,                                      # (H, 4H)
        "b0": (params["bih0"] + params["bhh0"]).reshape(1, -1),          # (1, 4H)
        "w1": jnp.concatenate([params["wih1"].T, params["whh1"].T], axis=0),  # (2H, 4H)
        "b1": (params["bih1"] + params["bhh1"]).reshape(1, -1),          # (1, 4H)
        "wtag_t": params["wtag"].T,                                      # (H, O)
        "btag": params["btag"].reshape(1, -1),                           # (1, O)
    }


@jax.jit
def mymodel_forward(x, x_lengths, y, kparams):
    """Equivalent of MyModel.forward(x, x_lengths, y).  `y` is unused."""
    del y
    B, T, E = x.shape
    H = kparams["whh0_t"].shape[0]
    O = kparams["wtag_t"].shape[1]
    Bp = ((B + 7) // 8) * 8                       # pad batch to sublane multiple

    x_tm = jnp.transpose(x, (1, 0, 2)).astype(jnp.float32)     # (T, B, E)
    lengths = x_lengths.astype(jnp.int32)
    if Bp != B:
        x_tm = jnp.pad(x_tm, ((0, 0), (0, Bp - B), (0, 0)))
        lengths = jnp.pad(lengths, (0, Bp - B))                # padded rows: len 0
    lengths = lengths.reshape(Bp, 1)

    out = pl.pallas_call(
        lstm_tag_kernel,
        out_shape=jax.ShapeDtypeStruct((T * Bp, O), jnp.float32),
        scratch_shapes=[
            pltpu.VMEM((T, Bp, 4 * H), jnp.float32),   # hoisted layer-0 gates
            pltpu.VMEM((T, Bp, H), jnp.float32),       # masked lstm_out buffer
        ],
    )(
        x_tm, lengths,
        kparams["wih0_t"], kparams["whh0_t"], kparams["b0"],
        kparams["w1"], kparams["b1"],
        kparams["wtag_t"], kparams["btag"],
    )

    # (T*Bp, O) -> (T, Bp, O) -> drop batch padding -> (B, T, O) -> (B*T, O)
    out = out.reshape(T, Bp, O)[:, :B, :]
    return jnp.transpose(out, (1, 0, 2)).reshape(B * T, O)


def reference_forward(x, x_lengths, params):
    """Pure-JAX reference of the same semantics (sanity check)."""
    B, T, E = x.shape
    H = params["whh0"].shape[1]

    def cell(x_t, h, c, wih, whh, bih, bhh):
        g = x_t @ wih.T + bih + h @ whh.T + bhh
        i = jax.nn.sigmoid(g[:, 0 * H:1 * H])
        f = jax.nn.sigmoid(g[:, 1 * H:2 * H])
        gg = jnp.tanh(g[:, 2 * H:3 * H])
        o = jax.nn.sigmoid(g[:, 3 * H:4 * H])
        c = f * c + i * gg
        h = o * jnp.tanh(c)
        return h, c

    h0 = jnp.zeros((B, H)); c0 = jnp.zeros((B, H))
    h1 = jnp.zeros((B, H)); c1 = jnp.zeros((B, H))
    outs = []
    for t in range(T):
        h0, c0 = cell(x[:, t, :], h0, c0, params["wih0"], params["whh0"],
                      params["bih0"], params["bhh0"])
        h1, c1 = cell(h0, h1, c1, params["wih1"], params["whh1"],
                      params["bih1"], params["bhh1"])
        mask = (t < x_lengths)[:, None]
        outs.append(jnp.where(mask, h1, 3.0))
    lstm_out = jnp.stack(outs, axis=1)                          # (B, T, H)
    flat = lstm_out.reshape(B * T, H)
    return flat @ params["wtag"].T + params["btag"]


if __name__ == "__main__":
    embedding_dim, hidden_dim, output_size = 16, 32, 8
    batch_size, seq_len = 4, 8

    key = jax.random.PRNGKey(0)
    k_param, k_x, k_y = jax.random.split(key, 3)

    params = init_params(k_param, embedding_dim, hidden_dim, output_size)
    kparams = prepare_kernel_params(params)   # one-time weight fuse/transpose

    x = jax.random.normal(k_x, (batch_size, seq_len, embedding_dim), jnp.float32)
    # pack_padded_sequence (enforce_sorted=True) needs descending lengths
    x_lengths = jnp.array([8, 6, 5, 3], dtype=jnp.int32)
    y = jax.random.randint(k_y, (batch_size, seq_len), 0, output_size)

    tag_scores = mymodel_forward(x, x_lengths, y, kparams)
    jax.block_until_ready(tag_scores)

    ref = reference_forward(x, x_lengths, params)
    np.testing.assert_allclose(np.asarray(tag_scores), np.asarray(ref),
                               rtol=1e-4, atol=1e-4)
    assert tag_scores.shape == (batch_size * seq_len, output_size)

    print("KERNEL_OK")
</pallas_src>

<mosaic_0001>
module attributes {stable_mosaic.version = 11 : i64} {
  func.func @lstm_tag_kernel(%arg0: memref<8x8x16xf32, #tpu.memory_space<vmem>>, %arg1: memref<8x1xi32, #tpu.memory_space<vmem>>, %arg2: memref<16x128xf32, #tpu.memory_space<vmem>>, %arg3: memref<32x128xf32, #tpu.memory_space<vmem>>, %arg4: memref<1x128xf32, #tpu.memory_space<vmem>>, %arg5: memref<64x128xf32, #tpu.memory_space<vmem>>, %arg6: memref<1x128xf32, #tpu.memory_space<vmem>>, %arg7: memref<32x8xf32, #tpu.memory_space<vmem>>, %arg8: memref<1x8xf32, #tpu.memory_space<vmem>>, %arg9: memref<64x8xf32, #tpu.memory_space<vmem>>, %arg10: memref<8x8x128xf32, #tpu.memory_space<vmem>>, %arg11: memref<8x8x32xf32, #tpu.memory_space<vmem>>) attributes {dimension_semantics = [], scalar_prefetch = 0 : i64, scratch_operands = 2 : i64, tpu.core_type = #tpu.core_type<tc>} {
    %c0 = arith.constant 0 : index
    %c0_0 = arith.constant 0 : index
    %c0_1 = arith.constant 0 : index
    %0 = vector.load %arg0[%c0, %c0_0, %c0_1] : memref<8x8x16xf32, #tpu.memory_space<vmem>>, vector<8x8x16xf32>
    %1 = vector.shape_cast %0 : vector<8x8x16xf32> to vector<64x16xf32>
    %c0_2 = arith.constant 0 : index
    %c0_3 = arith.constant 0 : index
    %2 = vector.load %arg2[%c0_2, %c0_3] : memref<16x128xf32, #tpu.memory_space<vmem>>, vector<16x128xf32>
    %cst = arith.constant dense<0.000000e+00> : vector<64x128xf32>
    %3 = tpu.matmul %1, %2, %cst {dimension_numbers = #tpu.dot_dimension_numbers<[1], [0], [0], [1], [0, 0, 1, 1], [], []>} : vector<64x16xf32>, vector<16x128xf32>, vector<64x128xf32> -> vector<64x128xf32>
    %c0_4 = arith.constant 0 : index
    %c0_5 = arith.constant 0 : index
    %4 = vector.load %arg4[%c0_4, %c0_5] : memref<1x128xf32, #tpu.memory_space<vmem>>, vector<1x128xf32>
    %5 = vector.broadcast %4 : vector<1x128xf32> to vector<64x128xf32>
    %6 = arith.addf %3, %5 : vector<64x128xf32>
    %7 = vector.shape_cast %6 : vector<64x128xf32> to vector<8x8x128xf32>
    %c0_6 = arith.constant 0 : index
    %c0_7 = arith.constant 0 : index
    %c0_8 = arith.constant 0 : index
    %8 = vector.load %arg10[%c0_6, %c0_7, %c0_8] : memref<8x8x128xf32, #tpu.memory_space<vmem>>, vector<8x8x128xf32>
    tpu.vector_store %arg10[%c0_6, %c0_7, %c0_8], %7 {strides = array<i32>} : memref<8x8x128xf32, #tpu.memory_space<vmem>>, vector<8x8x128xf32>,
    %c0_9 = arith.constant 0 : index
    %c0_10 = arith.constant 0 : index
    %9 = vector.load %arg1[%c0_9, %c0_10] : memref<8x1xi32, #tpu.memory_space<vmem>>, vector<8x1xi32>
    %c0_11 = arith.constant 0 : index
    %c0_12 = arith.constant 0 : index
    %10 = vector.load %arg3[%c0_11, %c0_12] : memref<32x128xf32, #tpu.memory_space<vmem>>, vector<32x128xf32>
    %c0_13 = arith.constant 0 : index
    %c0_14 = arith.constant 0 : index
    %11 = vector.load %arg5[%c0_13, %c0_14] : memref<64x128xf32, #tpu.memory_space<vmem>>, vector<64x128xf32>
    %c0_15 = arith.constant 0 : index
    %c0_16 = arith.constant 0 : index
    %12 = vector.load %arg6[%c0_15, %c0_16] : memref<1x128xf32, #tpu.memory_space<vmem>>, vector<1x128xf32>
    %13 = vector.shape_cast %12 : vector<1x128xf32> to vector<1x128xf32>
    %14 = vector.broadcast %13 : vector<1x128xf32> to vector<8x128xf32>
    %cst_17 = arith.constant 0.000000e+00 : f32
    %15 = vector.broadcast %cst_17 : f32 to vector<8x32xf32>
    %c0_i32 = arith.constant 0 : i32
    %16 = arith.index_cast %c0_i32 : i32 to index
    %c0_18 = arith.constant 0 : index
    %c0_19 = arith.constant 0 : index
    %17 = vector.load %arg10[%16, %c0_18, %c0_19] : memref<8x8x128xf32, #tpu.memory_space<vmem>>, vector<1x8x128xf32>
    %18 = vector.shape_cast %17 : vector<1x8x128xf32> to vector<8x128xf32>
    %cst_20 = arith.constant dense<0.000000e+00> : vector<8x128xf32>
    %19 = tpu.matmul %15, %10, %cst_20 {dimension_numbers = #tpu.dot_dimension_numbers<[1], [0], [0], [1], [0, 0, 1, 1], [], []>} : vector<8x32xf32>, vector<32x128xf32>, vector<8x128xf32> -> vector<8x128xf32>
    %20 = arith.addf %18, %19 : vector<8x128xf32>
    %21 = arith.negf %20 : vector<8x128xf32>
    %22 = math.exp %21 : vector<8x128xf32>
    %cst_21 = arith.constant 1.000000e+00 : f32
    %23 = vector.broadcast %cst_21 : f32 to vector<8x128xf32>
    %24 = arith.addf %23, %22 : vector<8x128xf32>
    %25 = arith.divf %23, %24 : vector<8x128xf32>
    %26 = math.tanh %20 : vector<8x128xf32>
    %27 = vector.extract_strided_slice %25 {offsets = [0, 0], sizes = [8, 32], strides = [1, 1]} : vector<8x128xf32> to vector<8x32xf32>
    %28 = vector.extract_strided_slice %25 {offsets = [0, 32], sizes = [8, 32], strides = [1, 1]} : vector<8x128xf32> to vector<8x32xf32>
    %29 = vector.extract_strided_slice %26 {offsets = [0, 64], sizes = [8, 32], strides = [1, 1]} : vector<8x128xf32> to vector<8x32xf32>
    %30 = vector.extract_strided_slice %25 {offsets = [0, 96], sizes = [8, 32], strides = [1, 1]} : vector<8x128xf32> to vector<8x32xf32>
    %31 = arith.mulf %28, %15 : vector<8x32xf32>
    %32 = arith.mulf %27, %29 : vector<8x32xf32>
    %33 = arith.addf %31, %32 : vector<8x32xf32>
    %34 = math.tanh %33 : vector<8x32xf32>
    %35 = arith.mulf %30, %34 : vector<8x32xf32>
    %36 = tpu.concatenate %35, %15 in 1 : vector<8x32xf32>, vector<8x32xf32> -> vector<8x64xf32>
    %cst_22 = arith.constant dense<0.000000e+00> : vector<8x128xf32>
    %37 = tpu.matmul %36, %11, %cst_22 {dimension_numbers = #tpu.dot_dimension_numbers<[1], [0], [0], [1], [0, 0, 1, 1], [], []>} : vector<8x64xf32>, vector<64x128xf32>, vector<8x128xf32> -> vector<8x128xf32>
    %38 = arith.addf %37, %14 : vector<8x128xf32>
    %39 = arith.negf %38 : vector<8x128xf32>
    %40 = math.exp %39 : vector<8x128xf32>
    %cst_23 = arith.constant 1.000000e+00 : f32
    %41 = vector.broadcast %cst_23 : f32 to vector<8x128xf32>
    %42 = arith.addf %41, %40 : vector<8x128xf32>
    %43 = arith.divf %41, %42 : vector<8x128xf32>
    %44 = math.tanh %38 : vector<8x128xf32>
    %45 = vector.extract_strided_slice %43 {offsets = [0, 0], sizes = [8, 32], strides = [1, 1]} : vector<8x128xf32> to vector<8x32xf32>
    %46 = vector.extract_strided_slice %43 {offsets = [0, 32], sizes = [8, 32], strides = [1, 1]} : vector<8x128xf32> to vector<8x32xf32>
    %47 = vector.extract_strided_slice %44 {offsets = [0, 64], sizes = [8, 32], strides = [1, 1]} : vector<8x128xf32> to vector<8x32xf32>
    %48 = vector.extract_strided_slice %43 {offsets = [0, 96], sizes = [8, 32], strides = [1, 1]} : vector<8x128xf32> to vector<8x32xf32>
    %49 = arith.mulf %46, %15 : vector<8x32xf32>
    %50 = arith.mulf %45, %47 : vector<8x32xf32>
    %51 = arith.addf %49, %50 : vector<8x32xf32>
    %52 = math.tanh %51 : vector<8x32xf32>
    %53 = arith.mulf %48, %52 : vector<8x32xf32>
    %54 = vector.broadcast %c0_i32 : i32 to vector<8x1xi32>
    %55 = arith.cmpi slt, %54, %9 : vector<8x1xi32>
    %cst_24 = arith.constant 3.000000e+00 : f32
    %56 = vector.shape_cast %55 : vector<8x1xi1> to vector<8x1xi1>
    %57 = vector.broadcast %56 : vector<8x1xi1> to vector<8x32xi1>
    %58 = vector.broadcast %cst_24 : f32 to vector<8x32xf32>
    %59 = arith.select %57, %53, %58 : vector<8x32xi1>, vector<8x32xf32>
    %60 = arith.index_cast %c0_i32 : i32 to index
    %c0_25 = arith.constant 0 : index
    %c0_26 = arith.constant 0 : index
    %61 = vector.load %arg11[%60, %c0_25, %c0_26] : memref<8x8x32xf32, #tpu.memory_space<vmem>>, vector<1x8x32xf32>
    %62 = vector.shape_cast %61 : vector<1x8x32xf32> to vector<8x32xf32>
    %63 = vector.shape_cast %59 : vector<8x32xf32> to vector<1x8x32xf32>
    tpu.vector_store %arg11[%60, %c0_25, %c0_26], %63 {strides = array<i32>} : memref<8x8x32xf32, #tpu.memory_space<vmem>>, vector<1x8x32xf32>,
    %c1_i32 = arith.constant 1 : i32
    %64 = arith.index_cast %c1_i32 : i32 to index
    %c0_27 = arith.constant 0 : index
    %c0_28 = arith.constant 0 : index
    %65 = vector.load %arg10[%64, %c0_27, %c0_28] : memref<8x8x128xf32, #tpu.memory_space<vmem>>, vector<1x8x128xf32>
    %66 = vector.shape_cast %65 : vector<1x8x128xf32> to vector<8x128xf32>
    %cst_29 = arith.constant dense<0.000000e+00> : vector<8x128xf32>
    %67 = tpu.matmul %35, %10, %cst_29 {dimension_numbers = #tpu.dot_dimension_numbers<[1], [0], [0], [1], [0, 0, 1, 1], [], []>} : vector<8x32xf32>, vector<32x128xf32>, vector<8x128xf32> -> vector<8x128xf32>
    %68 = arith.addf %66, %67 : vector<8x128xf32>
    %69 = arith.negf %68 : vector<8x128xf32>
    %70 = math.exp %69 : vector<8x128xf32>
    %cst_30 = arith.constant 1.000000e+00 : f32
    %71 = vector.broadcast %cst_30 : f32 to vector<8x128xf32>
    %72 = arith.addf %71, %70 : vector<8x128xf32>
    %73 = arith.divf %71, %72 : vector<8x128xf32>
    %74 = math.tanh %68 : vector<8x128xf32>
    %75 = vector.extract_strided_slice %73 {offsets = [0, 0], sizes = [8, 32], strides = [1, 1]} : vector<8x128xf32> to vector<8x32xf32>
    %76 = vector.extract_strided_slice %73 {offsets = [0, 32], sizes = [8, 32], strides = [1, 1]} : vector<8x128xf32> to vector<8x32xf32>
    %77 = vector.extract_strided_slice %74 {offsets = [0, 64], sizes = [8, 32], strides = [1, 1]} : vector<8x128xf32> to vector<8x32xf32>
    %78 = vector.extract_strided_slice %73 {offsets = [0, 96], sizes = [8, 32], strides = [1, 1]} : vector<8x128xf32> to vector<8x32xf32>
    %79 = arith.mulf %76, %33 : vector<8x32xf32>
    %80 = arith.mulf %75, %77 : vector<8x32xf32>
    %81 = arith.addf %79, %80 : vector<8x32xf32>
    %82 = math.tanh %81 : vector<8x32xf32>
    %83 = arith.mulf %78, %82 : vector<8x32xf32>
    %84 = tpu.concatenate %83, %53 in 1 : vector<8x32xf32>, vector<8x32xf32> -> vector<8x64xf32>
    %cst_31 = arith.constant dense<0.000000e+00> : vector<8x128xf32>
    %85 = tpu.matmul %84, %11, %cst_31 {dimension_numbers = #tpu.dot_dimension_numbers<[1], [0], [0], [1], [0, 0, 1, 1], [], []>} : vector<8x64xf32>, vector<64x128xf32>, vector<8x128xf32> -> vector<8x128xf32>
    %86 = arith.addf %85, %14 : vector<8x128xf32>
    %87 = arith.negf %86 : vector<8x128xf32>
    %88 = math.exp %87 : vector<8x128xf32>
    %cst_32 = arith.constant 1.000000e+00 : f32
    %89 = vector.broadcast %cst_32 : f32 to vector<8x128xf32>
    %90 = arith.addf %89, %88 : vector<8x128xf32>
    %91 = arith.divf %89, %90 : vector<8x128xf32>
    %92 = math.tanh %86 : vector<8x128xf32>
    %93 = vector.extract_strided_slice %91 {offsets = [0, 0], sizes = [8, 32], strides = [1, 1]} : vector<8x128xf32> to vector<8x32xf32>
    %94 = vector.extract_strided_slice %91 {offsets = [0, 32], sizes = [8, 32], strides = [1, 1]} : vector<8x128xf32> to vector<8x32xf32>
    %95 = vector.extract_strided_slice %92 {offsets = [0, 64], sizes = [8, 32], strides = [1, 1]} : vector<8x128xf32> to vector<8x32xf32>
    %96 = vector.extract_strided_slice %91 {offsets = [0, 96], sizes = [8, 32], strides = [1, 1]} : vector<8x128xf32> to vector<8x32xf32>
    %97 = arith.mulf %94, %51 : vector<8x32xf32>
    %98 = arith.mulf %93, %95 : vector<8x32xf32>
    %99 = arith.addf %97, %98 : vector<8x32xf32>
    %100 = math.tanh %99 : vector<8x32xf32>
    %101 = arith.mulf %96, %100 : vector<8x32xf32>
    %102 = vector.broadcast %c1_i32 : i32 to vector<8x1xi32>
    %103 = arith.cmpi slt, %102, %9 : vector<8x1xi32>
    %cst_33 = arith.constant 3.000000e+00 : f32
    %104 = vector.shape_cast %103 : vector<8x1xi1> to vector<8x1xi1>
    %105 = vector.broadcast %104 : vector<8x1xi1> to vector<8x32xi1>
    %106 = vector.broadcast %cst_33 : f32 to vector<8x32xf32>
    %107 = arith.select %105, %101, %106 : vector<8x32xi1>, vector<8x32xf32>
    %108 = arith.index_cast %c1_i32 : i32 to index
    %c0_34 = arith.constant 0 : index
    %c0_35 = arith.constant 0 : index
    %109 = vector.load %arg11[%108, %c0_34, %c0_35] : memref<8x8x32xf32, #tpu.memory_space<vmem>>, vector<1x8x32xf32>
    %110 = vector.shape_cast %109 : vector<1x8x32xf32> to vector<8x32xf32>
    %111 = vector.shape_cast %107 : vector<8x32xf32> to vector<1x8x32xf32>
    tpu.vector_store %arg11[%108, %c0_34, %c0_35], %111 {strides = array<i32>} : memref<8x8x32xf32, #tpu.memory_space<vmem>>, vector<1x8x32xf32>,
    %c2_i32 = arith.constant 2 : i32
    %112 = arith.index_cast %c2_i32 : i32 to index
    %c0_36 = arith.constant 0 : index
    %c0_37 = arith.constant 0 : index
    %113 = vector.load %arg10[%112, %c0_36, %c0_37] : memref<8x8x128xf32, #tpu.memory_space<vmem>>, vector<1x8x128xf32>
    %114 = vector.shape_cast %113 : vector<1x8x128xf32> to vector<8x128xf32>
    %cst_38 = arith.constant dense<0.000000e+00> : vector<8x128xf32>
    %115 = tpu.matmul %83, %10, %cst_38 {dimension_numbers = #tpu.dot_dimension_numbers<[1], [0], [0], [1], [0, 0, 1, 1], [], []>} : vector<8x32xf32>, vector<32x128xf32>, vector<8x128xf32> -> vector<8x128xf32>
    %116 = arith.addf %114, %115 : vector<8x128xf32>
    %117 = arith.negf %116 : vector<8x128xf32>
    %118 = math.exp %117 : vector<8x128xf32>
    %cst_39 = arith.constant 1.000000e+00 : f32
    %119 = vector.broadcast %cst_39 : f32 to vector<8x128xf32>
    %120 = arith.addf %119, %118 : vector<8x128xf32>
    %121 = arith.divf %119, %120 : vector<8x128xf32>
    %122 = math.tanh %116 : vector<8x128xf32>
    %123 = vector.extract_strided_slice %121 {offsets = [0, 0], sizes = [8, 32], strides = [1, 1]} : vector<8x128xf32> to vector<8x32xf32>
    %124 = vector.extract_strided_slice %121 {offsets = [0, 32], sizes = [8, 32], strides = [1, 1]} : vector<8x128xf32> to vector<8x32xf32>
    %125 = vector.extract_strided_slice %122 {offsets = [0, 64], sizes = [8, 32], strides = [1, 1]} : vector<8x128xf32> to vector<8x32xf32>
    %126 = vector.extract_strided_slice %121 {offsets = [0, 96], sizes = [8, 32], strides = [1, 1]} : vector<8x128xf32> to vector<8x32xf32>
    %127 = arith.mulf %124, %81 : vector<8x32xf32>
    %128 = arith.mulf %123, %125 : vector<8x32xf32>
    %129 = arith.addf %127, %128 : vector<8x32xf32>
    %130 = math.tanh %129 : vector<8x32xf32>
    %131 = arith.mulf %126, %130 : vector<8x32xf32>
    %132 = tpu.concatenate %131, %101 in 1 : vector<8x32xf32>, vector<8x32xf32> -> vector<8x64xf32>
    %cst_40 = arith.constant dense<0.000000e+00> : vector<8x128xf32>
    %133 = tpu.matmul %132, %11, %cst_40 {dimension_numbers = #tpu.dot_dimension_numbers<[1], [0], [0], [1], [0, 0, 1, 1], [], []>} : vector<8x64xf32>, vector<64x128xf32>, vector<8x128xf32> -> vector<8x128xf32>
    %134 = arith.addf %133, %14 : vector<8x128xf32>
    %135 = arith.negf %134 : vector<8x128xf32>
    %136 = math.exp %135 : vector<8x128xf32>
    %cst_41 = arith.constant 1.000000e+00 : f32
    %137 = vector.broadcast %cst_41 : f32 to vector<8x128xf32>
    %138 = arith.addf %137, %136 : vector<8x128xf32>
    %139 = arith.divf %137, %138 : vector<8x128xf32>
    %140 = math.tanh %134 : vector<8x128xf32>
    %141 = vector.extract_strided_slice %139 {offsets = [0, 0], sizes = [8, 32], strides = [1, 1]} : vector<8x128xf32> to vector<8x32xf32>
    %142 = vector.extract_strided_slice %139 {offsets = [0, 32], sizes = [8, 32], strides = [1, 1]} : vector<8x128xf32> to vector<8x32xf32>
    %143 = vector.extract_strided_slice %140 {offsets = [0, 64], sizes = [8, 32], strides = [1, 1]} : vector<8x128xf32> to vector<8x32xf32>
    %144 = vector.extract_strided_slice %139 {offsets = [0, 96], sizes = [8, 32], strides = [1, 1]} : vector<8x128xf32> to vector<8x32xf32>
    %145 = arith.mulf %142, %99 : vector<8x32xf32>
    %146 = arith.mulf %141, %143 : vector<8x32xf32>
    %147 = arith.addf %145, %146 : vector<8x32xf32>
    %148 = math.tanh %147 : vector<8x32xf32>
    %149 = arith.mulf %144, %148 : vector<8x32xf32>
    %150 = vector.broadcast %c2_i32 : i32 to vector<8x1xi32>
    %151 = arith.cmpi slt, %150, %9 : vector<8x1xi32>
    %cst_42 = arith.constant 3.000000e+00 : f32
    %152 = vector.shape_cast %151 : vector<8x1xi1> to vector<8x1xi1>
    %153 = vector.broadcast %152 : vector<8x1xi1> to vector<8x32xi1>
    %154 = vector.broadcast %cst_42 : f32 to vector<8x32xf32>
    %155 = arith.select %153, %149, %154 : vector<8x32xi1>, vector<8x32xf32>
    %156 = arith.index_cast %c2_i32 : i32 to index
    %c0_43 = arith.constant 0 : index
    %c0_44 = arith.constant 0 : index
    %157 = vector.load %arg11[%156, %c0_43, %c0_44] : memref<8x8x32xf32, #tpu.memory_space<vmem>>, vector<1x8x32xf32>
    %158 = vector.shape_cast %157 : vector<1x8x32xf32> to vector<8x32xf32>
    %159 = vector.shape_cast %155 : vector<8x32xf32> to vector<1x8x32xf32>
    tpu.vector_store %arg11[%156, %c0_43, %c0_44], %159 {strides = array<i32>} : memref<8x8x32xf32, #tpu.memory_space<vmem>>, vector<1x8x32xf32>,
    %c3_i32 = arith.constant 3 : i32
    %160 = arith.index_cast %c3_i32 : i32 to index
    %c0_45 = arith.constant 0 : index
    %c0_46 = arith.constant 0 : index
    %161 = vector.load %arg10[%160, %c0_45, %c0_46] : memref<8x8x128xf32, #tpu.memory_space<vmem>>, vector<1x8x128xf32>
    %162 = vector.shape_cast %161 : vector<1x8x128xf32> to vector<8x128xf32>
    %cst_47 = arith.constant dense<0.000000e+00> : vector<8x128xf32>
    %163 = tpu.matmul %131, %10, %cst_47 {dimension_numbers = #tpu.dot_dimension_numbers<[1], [0], [0], [1], [0, 0, 1, 1], [], []>} : vector<8x32xf32>, vector<32x128xf32>, vector<8x128xf32> -> vector<8x128xf32>
    %164 = arith.addf %162, %163 : vector<8x128xf32>
    %165 = arith.negf %164 : vector<8x128xf32>
    %166 = math.exp %165 : vector<8x128xf32>
    %cst_48 = arith.constant 1.000000e+00 : f32
    %167 = vector.broadcast %cst_48 : f32 to vector<8x128xf32>
    %168 = arith.addf %167, %166 : vector<8x128xf32>
    %169 = arith.divf %167, %168 : vector<8x128xf32>
    %170 = math.tanh %164 : vector<8x128xf32>
    %171 = vector.extract_strided_slice %169 {offsets = [0, 0], sizes = [8, 32], strides = [1, 1]} : vector<8x128xf32> to vector<8x32xf32>
    %172 = vector.extract_strided_slice %169 {offsets = [0, 32], sizes = [8, 32], strides = [1, 1]} : vector<8x128xf32> to vector<8x32xf32>
    %173 = vector.extract_strided_slice %170 {offsets = [0, 64], sizes = [8, 32], strides = [1, 1]} : vector<8x128xf32> to vector<8x32xf32>
    %174 = vector.extract_strided_slice %169 {offsets = [0, 96], sizes = [8, 32], strides = [1, 1]} : vector<8x128xf32> to vector<8x32xf32>
    %175 = arith.mulf %172, %129 : vector<8x32xf32>
    %176 = arith.mulf %171, %173 : vector<8x32xf32>
    %177 = arith.addf %175, %176 : vector<8x32xf32>
    %178 = math.tanh %177 : vector<8x32xf32>
    %179 = arith.mulf %174, %178 : vector<8x32xf32>
    %180 = tpu.concatenate %179, %149 in 1 : vector<8x32xf32>, vector<8x32xf32> -> vector<8x64xf32>
    %cst_49 = arith.constant dense<0.000000e+00> : vector<8x128xf32>
    %181 = tpu.matmul %180, %11, %cst_49 {dimension_numbers = #tpu.dot_dimension_numbers<[1], [0], [0], [1], [0, 0, 1, 1], [], []>} : vector<8x64xf32>, vector<64x128xf32>, vector<8x128xf32> -> vector<8x128xf32>
    %182 = arith.addf %181, %14 : vector<8x128xf32>
    %183 = arith.negf %182 : vector<8x128xf32>
    %184 = math.exp %183 : vector<8x128xf32>
    %cst_50 = arith.constant 1.000000e+00 : f32
    %185 = vector.broadcast %cst_50 : f32 to vector<8x128xf32>
    %186 = arith.addf %185, %184 : vector<8x128xf32>
    %187 = arith.divf %185, %186 : vector<8x128xf32>
    %188 = math.tanh %182 : vector<8x128xf32>
    %189 = vector.extract_strided_slice %187 {offsets = [0, 0], sizes = [8, 32], strides = [1, 1]} : vector<8x128xf32> to vector<8x32xf32>
    %190 = vector.extract_strided_slice %187 {offsets = [0, 32], sizes = [8, 32], strides = [1, 1]} : vector<8x128xf32> to vector<8x32xf32>
    %191 = vector.extract_strided_slice %188 {offsets = [0, 64], sizes = [8, 32], strides = [1, 1]} : vector<8x128xf32> to vector<8x32xf32>
    %192 = vector.extract_strided_slice %187 {offsets = [0, 96], sizes = [8, 32], strides = [1, 1]} : vector<8x128xf32> to vector<8x32xf32>
    %193 = arith.mulf %190, %147 : vector<8x32xf32>
    %194 = arith.mulf %189, %191 : vector<8x32xf32>
    %195 = arith.addf %193, %194 : vector<8x32xf32>
    %196 = math.tanh %195 : vector<8x32xf32>
    %197 = arith.mulf %192, %196 : vector<8x32xf32>
    %198 = vector.broadcast %c3_i32 : i32 to vector<8x1xi32>
    %199 = arith.cmpi slt, %198, %9 : vector<8x1xi32>
    %cst_51 = arith.constant 3.000000e+00 : f32
    %200 = vector.shape_cast %199 : vector<8x1xi1> to vector<8x1xi1>
    %201 = vector.broadcast %200 : vector<8x1xi1> to vector<8x32xi1>
    %202 = vector.broadcast %cst_51 : f32 to vector<8x32xf32>
    %203 = arith.select %201, %197, %202 : vector<8x32xi1>, vector<8x32xf32>
    %204 = arith.index_cast %c3_i32 : i32 to index
    %c0_52 = arith.constant 0 : index
    %c0_53 = arith.constant 0 : index
    %205 = vector.load %arg11[%204, %c0_52, %c0_53] : memref<8x8x32xf32, #tpu.memory_space<vmem>>, vector<1x8x32xf32>
    %206 = vector.shape_cast %205 : vector<1x8x32xf32> to vector<8x32xf32>
    %207 = vector.shape_cast %203 : vector<8x32xf32> to vector<1x8x32xf32>
    tpu.vector_store %arg11[%204, %c0_52, %c0_53], %207 {strides = array<i32>} : memref<8x8x32xf32, #tpu.memory_space<vmem>>, vector<1x8x32xf32>,
    %c4_i32 = arith.constant 4 : i32
    %208 = arith.index_cast %c4_i32 : i32 to index
    %c0_54 = arith.constant 0 : index
    %c0_55 = arith.constant 0 : index
    %209 = vector.load %arg10[%208, %c0_54, %c0_55] : memref<8x8x128xf32, #tpu.memory_space<vmem>>, vector<1x8x128xf32>
    %210 = vector.shape_cast %209 : vector<1x8x128xf32> to vector<8x128xf32>
    %cst_56 = arith.constant dense<0.000000e+00> : vector<8x128xf32>
    %211 = tpu.matmul %179, %10, %cst_56 {dimension_numbers = #tpu.dot_dimension_numbers<[1], [0], [0], [1], [0, 0, 1, 1], [], []>} : vector<8x32xf32>, vector<32x128xf32>, vector<8x128xf32> -> vector<8x128xf32>
    %212 = arith.addf %210, %211 : vector<8x128xf32>
    %213 = arith.negf %212 : vector<8x128xf32>
    %214 = math.exp %213 : vector<8x128xf32>
    %cst_57 = arith.constant 1.000000e+00 : f32
    %215 = vector.broadcast %cst_57 : f32 to vector<8x128xf32>
    %216 = arith.addf %215, %214 : vector<8x128xf32>
    %217 = arith.divf %215, %216 : vector<8x128xf32>
    %218 = math.tanh %212 : vector<8x128xf32>
    %219 = vector.extract_strided_slice %217 {offsets = [0, 0], sizes = [8, 32], strides = [1, 1]} : vector<8x128xf32> to vector<8x32xf32>
    %220 = vector.extract_strided_slice %217 {offsets = [0, 32], sizes = [8, 32], strides = [1, 1]} : vector<8x128xf32> to vector<8x32xf32>
    %221 = vector.extract_strided_slice %218 {offsets = [0, 64], sizes = [8, 32], strides = [1, 1]} : vector<8x128xf32> to vector<8x32xf32>
    %222 = vector.extract_strided_slice %217 {offsets = [0, 96], sizes = [8, 32], strides = [1, 1]} : vector<8x128xf32> to vector<8x32xf32>
    %223 = arith.mulf %220, %177 : vector<8x32xf32>
    %224 = arith.mulf %219, %221 : vector<8x32xf32>
    %225 = arith.addf %223, %224 : vector<8x32xf32>
    %226 = math.tanh %225 : vector<8x32xf32>
    %227 = arith.mulf %222, %226 : vector<8x32xf32>
    %228 = tpu.concatenate %227, %197 in 1 : vector<8x32xf32>, vector<8x32xf32> -> vector<8x64xf32>
    %cst_58 = arith.constant dense<0.000000e+00> : vector<8x128xf32>
    %229 = tpu.matmul %228, %11, %cst_58 {dimension_numbers = #tpu.dot_dimension_numbers<[1], [0], [0], [1], [0, 0, 1, 1], [], []>} : vector<8x64xf32>, vector<64x128xf32>, vector<8x128xf32> -> vector<8x128xf32>
    %230 = arith.addf %229, %14 : vector<8x128xf32>
    %231 = arith.negf %230 : vector<8x128xf32>
    %232 = math.exp %231 : vector<8x128xf32>
    %cst_59 = arith.constant 1.000000e+00 : f32
    %233 = vector.broadcast %cst_59 : f32 to vector<8x128xf32>
    %234 = arith.addf %233, %232 : vector<8x128xf32>
    %235 = arith.divf %233, %234 : vector<8x128xf32>
    %236 = math.tanh %230 : vector<8x128xf32>
    %237 = vector.extract_strided_slice %235 {offsets = [0, 0], sizes = [8, 32], strides = [1, 1]} : vector<8x128xf32> to vector<8x32xf32>
    %238 = vector.extract_strided_slice %235 {offsets = [0, 32], sizes = [8, 32], strides = [1, 1]} : vector<8x128xf32> to vector<8x32xf32>
    %239 = vector.extract_strided_slice %236 {offsets = [0, 64], sizes = [8, 32], strides = [1, 1]} : vector<8x128xf32> to vector<8x32xf32>
    %240 = vector.extract_strided_slice %235 {offsets = [0, 96], sizes = [8, 32], strides = [1, 1]} : vector<8x128xf32> to vector<8x32xf32>
    %241 = arith.mulf %238, %195 : vector<8x32xf32>
    %242 = arith.mulf %237, %239 : vector<8x32xf32>
    %243 = arith.addf %241, %242 : vector<8x32xf32>
    %244 = math.tanh %243 : vector<8x32xf32>
    %245 = arith.mulf %240, %244 : vector<8x32xf32>
    %246 = vector.broadcast %c4_i32 : i32 to vector<8x1xi32>
    %247 = arith.cmpi slt, %246, %9 : vector<8x1xi32>
    %cst_60 = arith.constant 3.000000e+00 : f32
    %248 = vector.shape_cast %247 : vector<8x1xi1> to vector<8x1xi1>
    %249 = vector.broadcast %248 : vector<8x1xi1> to vector<8x32xi1>
    %250 = vector.broadcast %cst_60 : f32 to vector<8x32xf32>
    %251 = arith.select %249, %245, %250 : vector<8x32xi1>, vector<8x32xf32>
    %252 = arith.index_cast %c4_i32 : i32 to index
    %c0_61 = arith.constant 0 : index
    %c0_62 = arith.constant 0 : index
    %253 = vector.load %arg11[%252, %c0_61, %c0_62] : memref<8x8x32xf32, #tpu.memory_space<vmem>>, vector<1x8x32xf32>
    %254 = vector.shape_cast %253 : vector<1x8x32xf32> to vector<8x32xf32>
    %255 = vector.shape_cast %251 : vector<8x32xf32> to vector<1x8x32xf32>
    tpu.vector_store %arg11[%252, %c0_61, %c0_62], %255 {strides = array<i32>} : memref<8x8x32xf32, #tpu.memory_space<vmem>>, vector<1x8x32xf32>,
    %c5_i32 = arith.constant 5 : i32
    %256 = arith.index_cast %c5_i32 : i32 to index
    %c0_63 = arith.constant 0 : index
    %c0_64 = arith.constant 0 : index
    %257 = vector.load %arg10[%256, %c0_63, %c0_64] : memref<8x8x128xf32, #tpu.memory_space<vmem>>, vector<1x8x128xf32>
    %258 = vector.shape_cast %257 : vector<1x8x128xf32> to vector<8x128xf32>
    %cst_65 = arith.constant dense<0.000000e+00> : vector<8x128xf32>
    %259 = tpu.matmul %227, %10, %cst_65 {dimension_numbers = #tpu.dot_dimension_numbers<[1], [0], [0], [1], [0, 0, 1, 1], [], []>} : vector<8x32xf32>, vector<32x128xf32>, vector<8x128xf32> -> vector<8x128xf32>
    %260 = arith.addf %258, %259 : vector<8x128xf32>
    %261 = arith.negf %260 : vector<8x128xf32>
    %262 = math.exp %261 : vector<8x128xf32>
    %cst_66 = arith.constant 1.000000e+00 : f32
    %263 = vector.broadcast %cst_66 : f32 to vector<8x128xf32>
    %264 = arith.addf %263, %262 : vector<8x128xf32>
    %265 = arith.divf %263, %264 : vector<8x128xf32>
    %266 = math.tanh %260 : vector<8x128xf32>
    %267 = vector.extract_strided_slice %265 {offsets = [0, 0], sizes = [8, 32], strides = [1, 1]} : vector<8x128xf32> to vector<8x32xf32>
    %268 = vector.extract_strided_slice %265 {offsets = [0, 32], sizes = [8, 32], strides = [1, 1]} : vector<8x128xf32> to vector<8x32xf32>
    %269 = vector.extract_strided_slice %266 {offsets = [0, 64], sizes = [8, 32], strides = [1, 1]} : vector<8x128xf32> to vector<8x32xf32>
    %270 = vector.extract_strided_slice %265 {offsets = [0, 96], sizes = [8, 32], strides = [1, 1]} : vector<8x128xf32> to vector<8x32xf32>
    %271 = arith.mulf %268, %225 : vector<8x32xf32>
    %272 = arith.mulf %267, %269 : vector<8x32xf32>
    %273 = arith.addf %271, %272 : vector<8x32xf32>
    %274 = math.tanh %273 : vector<8x32xf32>
    %275 = arith.mulf %270, %274 : vector<8x32xf32>
    %276 = tpu.concatenate %275, %245 in 1 : vector<8x32xf32>, vector<8x32xf32> -> vector<8x64xf32>
    %cst_67 = arith.constant dense<0.000000e+00> : vector<8x128xf32>
    %277 = tpu.matmul %276, %11, %cst_67 {dimension_numbers = #tpu.dot_dimension_numbers<[1], [0], [0], [1], [0, 0, 1, 1], [], []>} : vector<8x64xf32>, vector<64x128xf32>, vector<8x128xf32> -> vector<8x128xf32>
    %278 = arith.addf %277, %14 : vector<8x128xf32>
    %279 = arith.negf %278 : vector<8x128xf32>
    %280 = math.exp %279 : vector<8x128xf32>
    %cst_68 = arith.constant 1.000000e+00 : f32
    %281 = vector.broadcast %cst_68 : f32 to vector<8x128xf32>
    %282 = arith.addf %281, %280 : vector<8x128xf32>
    %283 = arith.divf %281, %282 : vector<8x128xf32>
    %284 = math.tanh %278 : vector<8x128xf32>
    %285 = vector.extract_strided_slice %283 {offsets = [0, 0], sizes = [8, 32], strides = [1, 1]} : vector<8x128xf32> to vector<8x32xf32>
    %286 = vector.extract_strided_slice %283 {offsets = [0, 32], sizes = [8, 32], strides = [1, 1]} : vector<8x128xf32> to vector<8x32xf32>
    %287 = vector.extract_strided_slice %284 {offsets = [0, 64], sizes = [8, 32], strides = [1, 1]} : vector<8x128xf32> to vector<8x32xf32>
    %288 = vector.extract_strided_slice %283 {offsets = [0, 96], sizes = [8, 32], strides = [1, 1]} : vector<8x128xf32> to vector<8x32xf32>
    %289 = arith.mulf %286, %243 : vector<8x32xf32>
    %290 = arith.mulf %285, %287 : vector<8x32xf32>
    %291 = arith.addf %289, %290 : vector<8x32xf32>
    %292 = math.tanh %291 : vector<8x32xf32>
    %293 = arith.mulf %288, %292 : vector<8x32xf32>
    %294 = vector.broadcast %c5_i32 : i32 to vector<8x1xi32>
    %295 = arith.cmpi slt, %294, %9 : vector<8x1xi32>
    %cst_69 = arith.constant 3.000000e+00 : f32
    %296 = vector.shape_cast %295 : vector<8x1xi1> to vector<8x1xi1>
    %297 = vector.broadcast %296 : vector<8x1xi1> to vector<8x32xi1>
    %298 = vector.broadcast %cst_69 : f32 to vector<8x32xf32>
    %299 = arith.select %297, %293, %298 : vector<8x32xi1>, vector<8x32xf32>
    %300 = arith.index_cast %c5_i32 : i32 to index
    %c0_70 = arith.constant 0 : index
    %c0_71 = arith.constant 0 : index
    %301 = vector.load %arg11[%300, %c0_70, %c0_71] : memref<8x8x32xf32, #tpu.memory_space<vmem>>, vector<1x8x32xf32>
    %302 = vector.shape_cast %301 : vector<1x8x32xf32> to vector<8x32xf32>
    %303 = vector.shape_cast %299 : vector<8x32xf32> to vector<1x8x32xf32>
    tpu.vector_store %arg11[%300, %c0_70, %c0_71], %303 {strides = array<i32>} : memref<8x8x32xf32, #tpu.memory_space<vmem>>, vector<1x8x32xf32>,
    %c6_i32 = arith.constant 6 : i32
    %304 = arith.index_cast %c6_i32 : i32 to index
    %c0_72 = arith.constant 0 : index
    %c0_73 = arith.constant 0 : index
    %305 = vector.load %arg10[%304, %c0_72, %c0_73] : memref<8x8x128xf32, #tpu.memory_space<vmem>>, vector<1x8x128xf32>
    %306 = vector.shape_cast %305 : vector<1x8x128xf32> to vector<8x128xf32>
    %cst_74 = arith.constant dense<0.000000e+00> : vector<8x128xf32>
    %307 = tpu.matmul %275, %10, %cst_74 {dimension_numbers = #tpu.dot_dimension_numbers<[1], [0], [0], [1], [0, 0, 1, 1], [], []>} : vector<8x32xf32>, vector<32x128xf32>, vector<8x128xf32> -> vector<8x128xf32>
    %308 = arith.addf %306, %307 : vector<8x128xf32>
    %309 = arith.negf %308 : vector<8x128xf32>
    %310 = math.exp %309 : vector<8x128xf32>
    %cst_75 = arith.constant 1.000000e+00 : f32
    %311 = vector.broadcast %cst_75 : f32 to vector<8x128xf32>
    %312 = arith.addf %311, %310 : vector<8x128xf32>
    %313 = arith.divf %311, %312 : vector<8x128xf32>
    %314 = math.tanh %308 : vector<8x128xf32>
    %315 = vector.extract_strided_slice %313 {offsets = [0, 0], sizes = [8, 32], strides = [1, 1]} : vector<8x128xf32> to vector<8x32xf32>
    %316 = vector.extract_strided_slice %313 {offsets = [0, 32], sizes = [8, 32], strides = [1, 1]} : vector<8x128xf32> to vector<8x32xf32>
    %317 = vector.extract_strided_slice %314 {offsets = [0, 64], sizes = [8, 32], strides = [1, 1]} : vector<8x128xf32> to vector<8x32xf32>
    %318 = vector.extract_strided_slice %313 {offsets = [0, 96], sizes = [8, 32], strides = [1, 1]} : vector<8x128xf32> to vector<8x32xf32>
    %319 = arith.mulf %316, %273 : vector<8x32xf32>
    %320 = arith.mulf %315, %317 : vector<8x32xf32>
    %321 = arith.addf %319, %320 : vector<8x32xf32>
    %322 = math.tanh %321 : vector<8x32xf32>
    %323 = arith.mulf %318, %322 : vector<8x32xf32>
    %324 = tpu.concatenate %323, %293 in 1 : vector<8x32xf32>, vector<8x32xf32> -> vector<8x64xf32>
    %cst_76 = arith.constant dense<0.000000e+00> : vector<8x128xf32>
    %325 = tpu.matmul %324, %11, %cst_76 {dimension_numbers = #tpu.dot_dimension_numbers<[1], [0], [0], [1], [0, 0, 1, 1], [], []>} : vector<8x64xf32>, vector<64x128xf32>, vector<8x128xf32> -> vector<8x128xf32>
    %326 = arith.addf %325, %14 : vector<8x128xf32>
    %327 = arith.negf %326 : vector<8x128xf32>
    %328 = math.exp %327 : vector<8x128xf32>
    %cst_77 = arith.constant 1.000000e+00 : f32
    %329 = vector.broadcast %cst_77 : f32 to vector<8x128xf32>
    %330 = arith.addf %329, %328 : vector<8x128xf32>
    %331 = arith.divf %329, %330 : vector<8x128xf32>
    %332 = math.tanh %326 : vector<8x128xf32>
    %333 = vector.extract_strided_slice %331 {offsets = [0, 0], sizes = [8, 32], strides = [1, 1]} : vector<8x128xf32> to vector<8x32xf32>
    %334 = vector.extract_strided_slice %331 {offsets = [0, 32], sizes = [8, 32], strides = [1, 1]} : vector<8x128xf32> to vector<8x32xf32>
    %335 = vector.extract_strided_slice %332 {offsets = [0, 64], sizes = [8, 32], strides = [1, 1]} : vector<8x128xf32> to vector<8x32xf32>
    %336 = vector.extract_strided_slice %331 {offsets = [0, 96], sizes = [8, 32], strides = [1, 1]} : vector<8x128xf32> to vector<8x32xf32>
    %337 = arith.mulf %334, %291 : vector<8x32xf32>
    %338 = arith.mulf %333, %335 : vector<8x32xf32>
    %339 = arith.addf %337, %338 : vector<8x32xf32>
    %340 = math.tanh %339 : vector<8x32xf32>
    %341 = arith.mulf %336, %340 : vector<8x32xf32>
    %342 = vector.broadcast %c6_i32 : i32 to vector<8x1xi32>
    %343 = arith.cmpi slt, %342, %9 : vector<8x1xi32>
    %cst_78 = arith.constant 3.000000e+00 : f32
    %344 = vector.shape_cast %343 : vector<8x1xi1> to vector<8x1xi1>
    %345 = vector.broadcast %344 : vector<8x1xi1> to vector<8x32xi1>
    %346 = vector.broadcast %cst_78 : f32 to vector<8x32xf32>
    %347 = arith.select %345, %341, %346 : vector<8x32xi1>, vector<8x32xf32>
    %348 = arith.index_cast %c6_i32 : i32 to index
    %c0_79 = arith.constant 0 : index
    %c0_80 = arith.constant 0 : index
    %349 = vector.load %arg11[%348, %c0_79, %c0_80] : memref<8x8x32xf32, #tpu.memory_space<vmem>>, vector<1x8x32xf32>
    %350 = vector.shape_cast %349 : vector<1x8x32xf32> to vector<8x32xf32>
    %351 = vector.shape_cast %347 : vector<8x32xf32> to vector<1x8x32xf32>
    tpu.vector_store %arg11[%348, %c0_79, %c0_80], %351 {strides = array<i32>} : memref<8x8x32xf32, #tpu.memory_space<vmem>>, vector<1x8x32xf32>,
    %c7_i32 = arith.constant 7 : i32
    %352 = arith.index_cast %c7_i32 : i32 to index
    %c0_81 = arith.constant 0 : index
    %c0_82 = arith.constant 0 : index
    %353 = vector.load %arg10[%352, %c0_81, %c0_82] : memref<8x8x128xf32, #tpu.memory_space<vmem>>, vector<1x8x128xf32>
    %354 = vector.shape_cast %353 : vector<1x8x128xf32> to vector<8x128xf32>
    %cst_83 = arith.constant dense<0.000000e+00> : vector<8x128xf32>
    %355 = tpu.matmul %323, %10, %cst_83 {dimension_numbers = #tpu.dot_dimension_numbers<[1], [0], [0], [1], [0, 0, 1, 1], [], []>} : vector<8x32xf32>, vector<32x128xf32>, vector<8x128xf32> -> vector<8x128xf32>
    %356 = arith.addf %354, %355 : vector<8x128xf32>
    %357 = arith.negf %356 : vector<8x128xf32>
    %358 = math.exp %357 : vector<8x128xf32>
    %cst_84 = arith.constant 1.000000e+00 : f32
    %359 = vector.broadcast %cst_84 : f32 to vector<8x128xf32>
    %360 = arith.addf %359, %358 : vector<8x128xf32>
    %361 = arith.divf %359, %360 : vector<8x128xf32>
    %362 = math.tanh %356 : vector<8x128xf32>
    %363 = vector.extract_strided_slice %361 {offsets = [0, 0], sizes = [8, 32], strides = [1, 1]} : vector<8x128xf32> to vector<8x32xf32>
    %364 = vector.extract_strided_slice %361 {offsets = [0, 32], sizes = [8, 32], strides = [1, 1]} : vector<8x128xf32> to vector<8x32xf32>
    %365 = vector.extract_strided_slice %362 {offsets = [0, 64], sizes = [8, 32], strides = [1, 1]} : vector<8x128xf32> to vector<8x32xf32>
    %366 = vector.extract_strided_slice %361 {offsets = [0, 96], sizes = [8, 32], strides = [1, 1]} : vector<8x128xf32> to vector<8x32xf32>
    %367 = arith.mulf %364, %321 : vector<8x32xf32>
    %368 = arith.mulf %363, %365 : vector<8x32xf32>
    %369 = arith.addf %367, %368 : vector<8x32xf32>
    %370 = math.tanh %369 : vector<8x32xf32>
    %371 = arith.mulf %366, %370 : vector<8x32xf32>
    %372 = tpu.concatenate %371, %341 in 1 : vector<8x32xf32>, vector<8x32xf32> -> vector<8x64xf32>
    %cst_85 = arith.constant dense<0.000000e+00> : vector<8x128xf32>
    %373 = tpu.matmul %372, %11, %cst_85 {dimension_numbers = #tpu.dot_dimension_numbers<[1], [0], [0], [1], [0, 0, 1, 1], [], []>} : vector<8x64xf32>, vector<64x128xf32>, vector<8x128xf32> -> vector<8x128xf32>
    %374 = arith.addf %373, %14 : vector<8x128xf32>
    %375 = arith.negf %374 : vector<8x128xf32>
    %376 = math.exp %375 : vector<8x128xf32>
    %cst_86 = arith.constant 1.000000e+00 : f32
    %377 = vector.broadcast %cst_86 : f32 to vector<8x128xf32>
    %378 = arith.addf %377, %376 : vector<8x128xf32>
    %379 = arith.divf %377, %378 : vector<8x128xf32>
    %380 = math.tanh %374 : vector<8x128xf32>
    %381 = vector.extract_strided_slice %379 {offsets = [0, 0], sizes = [8, 32], strides = [1, 1]} : vector<8x128xf32> to vector<8x32xf32>
    %382 = vector.extract_strided_slice %379 {offsets = [0, 32], sizes = [8, 32], strides = [1, 1]} : vector<8x128xf32> to vector<8x32xf32>
    %383 = vector.extract_strided_slice %380 {offsets = [0, 64], sizes = [8, 32], strides = [1, 1]} : vector<8x128xf32> to vector<8x32xf32>
    %384 = vector.extract_strided_slice %379 {offsets = [0, 96], sizes = [8, 32], strides = [1, 1]} : vector<8x128xf32> to vector<8x32xf32>
    %385 = arith.mulf %382, %339 : vector<8x32xf32>
    %386 = arith.mulf %381, %383 : vector<8x32xf32>
    %387 = arith.addf %385, %386 : vector<8x32xf32>
    %388 = math.tanh %387 : vector<8x32xf32>
    %389 = arith.mulf %384, %388 : vector<8x32xf32>
    %390 = vector.broadcast %c7_i32 : i32 to vector<8x1xi32>
    %391 = arith.cmpi slt, %390, %9 : vector<8x1xi32>
    %cst_87 = arith.constant 3.000000e+00 : f32
    %392 = vector.shape_cast %391 : vector<8x1xi1> to vector<8x1xi1>
    %393 = vector.broadcast %392 : vector<8x1xi1> to vector<8x32xi1>
    %394 = vector.broadcast %cst_87 : f32 to vector<8x32xf32>
    %395 = arith.select %393, %389, %394 : vector<8x32xi1>, vector<8x32xf32>
    %396 = arith.index_cast %c7_i32 : i32 to index
    %c0_88 = arith.constant 0 : index
    %c0_89 = arith.constant 0 : index
    %397 = vector.load %arg11[%396, %c0_88, %c0_89] : memref<8x8x32xf32, #tpu.memory_space<vmem>>, vector<1x8x32xf32>
    %398 = vector.shape_cast %397 : vector<1x8x32xf32> to vector<8x32xf32>
    %399 = vector.shape_cast %395 : vector<8x32xf32> to vector<1x8x32xf32>
    tpu.vector_store %arg11[%396, %c0_88, %c0_89], %399 {strides = array<i32>} : memref<8x8x32xf32, #tpu.memory_space<vmem>>, vector<1x8x32xf32>,
    %c8_i32 = arith.constant 8 : i32
    %c0_90 = arith.constant 0 : index
    %c0_91 = arith.constant 0 : index
    %c0_92 = arith.constant 0 : index
    %400 = vector.load %arg11[%c0_90, %c0_91, %c0_92] : memref<8x8x32xf32, #tpu.memory_space<vmem>>, vector<8x8x32xf32>
    %401 = vector.shape_cast %400 : vector<8x8x32xf32> to vector<64x32xf32>
    %c0_93 = arith.constant 0 : index
    %c0_94 = arith.constant 0 : index
    %402 = vector.load %arg7[%c0_93, %c0_94] : memref<32x8xf32, #tpu.memory_space<vmem>>, vector<32x8xf32>
    %cst_95 = arith.constant dense<0.000000e+00> : vector<64x8xf32>
    %403 = tpu.matmul %401, %402, %cst_95 {dimension_numbers = #tpu.dot_dimension_numbers<[1], [0], [0], [1], [0, 0, 1, 1], [], []>} : vector<64x32xf32>, vector<32x8xf32>, vector<64x8xf32> -> vector<64x8xf32>
    %c0_96 = arith.constant 0 : index
    %c0_97 = arith.constant 0 : index
    %404 = vector.load %arg8[%c0_96, %c0_97] : memref<1x8xf32, #tpu.memory_space<vmem>>, vector<1x8xf32>
    %405 = vector.broadcast %404 : vector<1x8xf32> to vector<64x8xf32>
    %406 = arith.addf %403, %405 : vector<64x8xf32>
    %c0_98 = arith.constant 0 : index
    %c0_99 = arith.constant 0 : index
    %407 = vector.load %arg9[%c0_98, %c0_99] : memref<64x8xf32, #tpu.memory_space<vmem>>, vector<64x8xf32>
    tpu.vector_store %arg9[%c0_98, %c0_99], %406 {strides = array<i32>} : memref<64x8xf32, #tpu.memory_space<vmem>>, vector<64x8xf32>,
    return
  }
}

</mosaic_0001>

<bundles_post_ra>
// kernel: mymodel_forward.1
= control target key start
LH: loop header
LB: loop body
LE: loop exit
PB: predicated region body
PF: predicated region fallthrough
CT: control target
= control target key end

     0   :  { %vm49_vm0 = vcmask 130048   ;;  %v2861_v0 = vmov 0.0|0.0   ;;  %vm2862_vm1 = vmmov 0   ;;  %v2863_v4 = vmov 0.0   ;;  %s2864_s25 = smov 64   ;;  %s3420_s2 = inlined_call_operand.vmem [shape: f32[16,128], index: 2, kind: input, shape index: {}]   ;;  %s3421_s3 = inlined_call_operand.vmem [shape: f32[32,128], index: 3, kind: input, shape index: {}]   ;;  %s3422_s0 = inlined_call_operand.vmem [shape: f32[8,8,16], index: 0, kind: input, shape index: {}]   ;;  %s3423_s4 = inlined_call_operand.vmem [shape: f32[1,128], index: 4, kind: input, shape index: {}]   ;;  %s3424_s5 = inlined_call_operand.vmem [shape: f32[64,128], index: 5, kind: input, shape index: {}]   ;;  %s3425_s6 = inlined_call_operand.vmem [shape: f32[1,128], index: 6, kind: input, shape index: {}]   ;;  %s3426_s1 = inlined_call_operand.vmem [shape: s32[8,1], index: 1, kind: input, shape index: {}]   ;;  %s3427_s7 = inlined_call_operand.vmem [shape: f32[32,8], index: 7, kind: input, shape index: {}]   ;;  %s3428_s8 = inlined_call_operand.vmem [shape: f32[1,8], index: 8, kind: input, shape index: {}]   ;;  %s3429_s9 = inlined_call_operand.vmem [shape: f32[64,8], index: 9, kind: output, shape index: {}]  }
   0x1   :  { %2573 = vmatprep.subr.bf16.mxu1 %v2861_v0  ;;  %v40_v1 = vld [vmem:[%s3420_s2] sm:$0xff]  ;;  %v41_v2 = vld [vmem:[%s3420_s2 + $0x8] sm:$0xff]  ;;  %2317 = vmatprep.mubr.msk.f32.mxu1 %vm2862_vm1, %v2863_v4  ;;  %v190_v9 = vld [vmem:[%s3421_s3 + $0x10] sm:$0xff]  ;;  %vm208_vm2 = vcmask 261120   ;;  %vm312_vm3 = vcmask 523264  }
   0x2   :  { %v188_v3 = vld [vmem:[%s3421_s3] sm:$0xff]  ;;  %v2569_v5 = vpack.c.bf16 %v41_v2, %v40_v1  ;;  %v189_v6 = vld [vmem:[%s3421_s3 + $0x8] sm:$0xff]  ;;  %v191_v10 = vld [vmem:[%s3421_s3 + $0x18] sm:$0xff] }
   0x3   :  { %v32_v7 = vld [vmem:[%s3422_s0] sm:$0xff]  ;;  %v2935_v8 = vpack.c.bf16 %v189_v6, %v188_v3  ;;  %v33_v11 = vld [vmem:[%s3422_s0 + $0x8] sm:$0xff]  ;;  %v2948_v12 = vpack.c.bf16 %v191_v10, %v190_v9  ;;  %v34_v30 = vld [vmem:[%s3422_s0 + $0x10] sm:$0xff] }
   0x4   :  { %2297 = vmatprep.mubr.msk.f32.mxu0 %vm49_vm0, %v32_v7  ;;  %2570 = vmatprep.subr.bf16.mxu0 %v2569_v5  ;;  %v2965_v13 = vld [vmem:[%s3423_s4] ss:$0 sm:$0xff]  ;;  %s2865_s4 = smov 32   ;;  %v35_v31 = vld [vmem:[%s3422_s0 + $0x18] sm:$0xff]  ;;  %v193_v34 = vld [vmem:[%s3424_s5 + $0x8] sm:$0xff] }
   0x5   :  { %2575 = vmatpush3.bf16.msra.mxu1 %v2935_v8  ;;  %2572 = vmatpush3.bf16.msra.mxu0 %v2569_v5  ;;  %v36_v32 = vld [vmem:[%s3422_s0 + $0x20] sm:$0xff]  ;;  %v194_v35 = vld [vmem:[%s3424_s5 + $0x10] sm:$0xff]  ;;  %v195_v37 = vld [vmem:[%s3424_s5 + $0x18] sm:$0xff] }
   0x6   :  { %2576 = vmatprep.subr.bf16.mxu1 %v2861_v0  ;;  %2579 = vmatprep.subr.bf16.mxu0 %v2861_v0  ;;  %v192_v33 = vld [vmem:[%s3424_s5] sm:$0xff]  ;;  %v37_v38 = vld [vmem:[%s3422_s0 + $0x28] sm:$0xff]  ;;  %v3005_v39 = vpack.c.bf16 %v195_v37, %v194_v35  ;;  %v38_v40 = vld [vmem:[%s3422_s0 + $0x30] sm:$0xff] }
   0x7   :  { %v2994_v36 = vpack.c.bf16 %v193_v34, %v192_v33  ;;  %v196_v41 = vld [vmem:[%s3424_s5 + $0x20] sm:$0xff]  ;;  %v197_v42 = vld [vmem:[%s3424_s5 + $0x28] sm:$0xff]  ;;  %v39_v43 = vld [vmem:[%s3422_s0 + $0x38] sm:$0xff] }
   0x8   :  { %2298 = vmatmul.mubr.msk.f32.vlgmr.msra.gmra.mrb[0].mxu0 %vm49_vm0, %v33_v11  ;;  %v3023_v44 = vpack.c.bf16 %v197_v42, %v196_v41  ;;  %v198_v45 = vld [vmem:[%s3424_s5 + $0x30] sm:$0xff]  ;;  %v199_v46 = vld [vmem:[%s3424_s5 + $0x38] sm:$0xff]  ;;  %v3079_v60 = vld [vmem:[%s3425_s6] ss:$0 sm:$0xff] }
   0x9   :  { %2578 = vmatpush3.bf16.msra.mxu1 %v2948_v12  ;;  %2300 = vmatprep.mubr.msk.f32.mxu0 %vm49_vm0, %v34_v30  ;;  %v3037_v48 = vpack.c.bf16 %v199_v46, %v198_v45 }
   0xa   :  { %2591 = vmatprep.subr.bf16.mxu1 %v2861_v0  ;;  %2581 = vmatpush3.bf16.msra.mxu0 %v2994_v36 }
   0xb   :  { %2582 = vmatprep.subr.bf16.mxu0 %v2861_v0 }
   0xc   :  { %2318 = vmatmul.mubr.f32.vlgmr.msra.gmra.mrb[0].mxu1 %v2863_v4  ;;  %2301 = vmatmul.mubr.msk.f32.gmra.mrb[2].mxu0 %vm49_vm0, %v35_v31 }
   0xd   :  { %2593 = vmatpush3.bf16.msra.mxu1 %v2935_v8  ;;  %2347 = vmatprep.mubr.msk.f32.mxu1 %vm2862_vm1, %v2863_v4 }
   0xe   :  { %2594 = vmatprep.subr.bf16.mxu1 %v2861_v0  ;;  %2303 = vmatprep.mubr.msk.f32.mxu0 %vm49_vm0, %v36_v32 }
   0xf   :  { %2584 = vmatpush3.bf16.msra.mxu0 %v3005_v39 }
  0x10   :  { %2304 = vmatmul.mubr.msk.f32.gmra.mrb[4].mxu0 %vm49_vm0, %v37_v38  ;;  %2585 = vmatprep.subr.bf16.mxu0 %v2861_v0 }
  0x11   :  { %2596 = vmatpush3.bf16.msra.mxu1 %v2948_v12  ;;  %2306 = vmatprep.mubr.msk.f32.mxu0 %vm49_vm0, %v38_v40 }
  0x12   :  { %2597 = vmatprep.subr.bf16.mxu1 %v2861_v0 }
  0x13   :  { %2587 = vmatpush3.bf16.msra.mxu0 %v3023_v44 }
  0x14   :  { %2307 = vmatmul.mubr.msk.f32.gmra.mrb[6].mxu0 %vm49_vm0, %v39_v43  ;;  %2588 = vmatprep.subr.bf16.mxu0 %v2861_v0 }
  0x15   :  { %2336 = vmatprep.mubr.msk.f32.mxu0 %vm2862_vm1, %v2863_v4 }
  0x17   :  { %2590 = vmatpush3.bf16.msra.mxu0 %v3037_v48 }
  0x18   :  { %2609 = vmatprep.subr.bf16.mxu0 %v2861_v0 }
  0xdb   :  { %v2967_v14 = vpop.f32.mrb[0].mxu0 }
  0xdc   :  { %v140_v15 = vpop.f32.mrb[1].mxu0  ;;  %v146_v59 = vadd.f32 %v2967_v14, %v2965_v13 }
  0xdd   :  { %v141_v16 = vadd.f32 %v2965_v13, %v140_v15 }
  0xdf   :  { %v278_v17 = vpop.f32.mrb[0].mxu1  ;;  %v3043_v51 = vpop.f32.mrb[2].mxu0 }
  0xe0   :  { %v282_v18 = vadd.f32 %v278_v17, %v141_v16  ;;  %v2319_v19 = vpop.f32.mrb[1].mxu1  ;;  %v3045_v52 = vpop.f32.mrb[3].mxu0 }
  0xe1   :  { %v151_v38 = vadd.f32 %v2965_v13, %v3045_v52 }
  0xe2   :  { %2733 = vtanh.f32 %v282_v18  ;;  %v2119_v21 = vmul.f32 -1.442695, %v282_v18 }
  0xe3   :  { %v3047_v53 = vpop.f32.mrb[4].mxu0 }
  0xe4   :  { %2735 = vpow2.f32 %v2119_v21  ;;  %v3049_v54 = vpop.f32.mrb[5].mxu0 }
  0xe7   :  { %v3051_v55 = vpop.f32.mrb[6].mxu0 }
  0xe8   :  { %v3053_v56 = vpop.f32.mrb[7].mxu0 }
  0xec   :  { %v2734_v20 = vpop.eup %2733 }
  0xed   :  { %292 = vrot.lane.b32.xlu0 %v2734_v20, %s2864_s25 }
  0xee   :  { %v2736_v22 = vpop.eup %2735 }
  0xef   :  { %v286_v23 = vadd.f32 1.0, %v2736_v22 }
  0xf1   :  { %2737 = vrcp.f32 %v286_v23 }
  0xfb   :  { %v2738_v24 = vpop.eup %2737 }
  0xfc   :  { %v290_v27 = vmul.f32 0.0, %v2738_v24 }
 0x15f   :  { %v293_v25 = vpop.permute.xlu0 %292 }
 0x160   :  { %v295_v26 = vmul.f32 %v2738_v24, %v293_v25 }
 0x162   :  { %297 = vrot.lane.b32.xlu0 %v295_v26, %s2865_s4 }
 0x1d4   :  { %v298_v28 = vpop.permute.xlu0 %297 }
 0x1d5   :  { %v2972_v29 = vadd.f32 %v298_v28, %v290_v27 }
 0x1d7   :  { %2739 = vtanh.f32 %v2972_v29 }
 0x1e1   :  { %v2740_v47 = vpop.eup %2739 }
 0x1e2   :  { %303 = vrot.lane.b32.xlu1 %v2740_v47, %s2864_s25 }
 0x254   :  { %v304_v49 = vpop.permute.xlu1 %303 }
 0x255   :  { %v306_v50 = vmul.f32 %v2738_v24, %v304_v49 }
 0x257   :  { %308 = vrot.lane.b32.xlu1 %v306_v50, %s2865_s4 }
 0x2c9   :  { %v309_v57 = vpop.permute.xlu1 %308 }
 0x2ca   :  { %v311_v58 = vsel %vm208_vm2, %v309_v57, 0.0  ;;  %2348 = vmatmul.mubr.msk.f32.vlgmr.msra.gmra.mrb[2].mxu1 %vm208_vm2, %v309_v57 }
 0x2cb   :  { %2337 = vmatmul.mubr.msk.f32.vlgmr.msra.gmra.mrb[8].mxu0 %vm312_vm3, %v311_v58  ;;  %2599 = vmatpush3.bf16.msra.mxu1 %v2994_v36 }
 0x2cc   :  { %2600 = vmatprep.subr.bf16.mxu1 %v2861_v0  ;;  %2611 = vmatpush3.bf16.msra.mxu0 %v2935_v8 }
 0x2cd   :  { %2612 = vmatprep.subr.bf16.mxu0 %v2861_v0  ;;  %2377 = vmatprep.mubr.msk.f32.mxu0 %vm2862_vm1, %v2863_v4 }
 0x2ce   :  { %2366 = vmatprep.mubr.msk.f32.mxu1 %vm2862_vm1, %v2863_v4 }
 0x2cf   :  { %2602 = vmatpush3.bf16.msra.mxu1 %v3005_v39 }
 0x2d0   :  { %2603 = vmatprep.subr.bf16.mxu1 %v2861_v0  ;;  %2614 = vmatpush3.bf16.msra.mxu0 %v2948_v12 }
 0x2d1   :  { %2615 = vmatprep.subr.bf16.mxu0 %v2861_v0 }
 0x2d3   :  { %2605 = vmatpush3.bf16.msra.mxu1 %v3023_v44 }
 0x2d4   :  { %2606 = vmatprep.subr.bf16.mxu1 %v2861_v0 }
 0x2d7   :  { %2608 = vmatpush3.bf16.msra.mxu1 %v3037_v48 }
 0x2d8   :  { %2627 = vmatprep.subr.bf16.mxu1 %v2861_v0 }
 0x39d   :  { %v492_v61 = vpop.f32.mrb[2].mxu1 }
 0x39e   :  { %v496_v62 = vadd.f32 %v492_v61, %v146_v59  ;;  %v382_v63 = vpop.f32.mrb[8].mxu0  ;;  %v2349_v1 = vpop.f32.mrb[3].mxu1 }
 0x39f   :  { %v383_v2 = vadd.f32 %v3079_v60, %v382_v63  ;;  %v2338_v3 = vpop.f32.mrb[9].mxu0 }
 0x3a0   :  { %2741 = vtanh.f32 %v496_v62  ;;  %v2123_v7 = vmul.f32 -1.442695, %v496_v62 }
 0x3a1   :  { %2743 = vtanh.f32 %v383_v2  ;;  %v2121_v9 = vmul.f32 -1.442695, %v383_v2 }
 0x3a2   :  { %2745 = vpow2.f32 %v2123_v7 }
 0x3a3   :  { %2747 = vpow2.f32 %v2121_v9 }
 0x3aa   :  { %v2742_v5 = vpop.eup %2741 }
 0x3ab   :  { %v2744_v6 = vpop.eup %2743  ;;  %506 = vrot.lane.b32.xlu1 %v2742_v5, %s2864_s25 }
 0x3ac   :  { %395 = vrot.lane.b32.xlu0 %v2744_v6, %s2864_s25  ;;  %v2746_v10 = vpop.eup %2745 }
 0x3ad   :  { %v2748_v11 = vpop.eup %2747  ;;  %v500_v14 = vadd.f32 1.0, %v2746_v10 }
 0x3ae   :  { %v389_v15 = vadd.f32 1.0, %v2748_v11 }
 0x3af   :  { %2749 = vrcp.f32 %v500_v14 }
 0x3b0   :  { %2751 = vrcp.f32 %v389_v15 }
 0x3b9   :  { %v2750_v16 = vpop.eup %2749 }
 0x3ba   :  { %v2752_v18 = vpop.eup %2751  ;;  %v504_v22 = vmul.f32 %v2750_v16, %v2972_v29 }
 0x3bb   :  { %v393_v24 = vmul.f32 0.0, %v2752_v18 }
 0x41d   :  { %v507_v17 = vpop.permute.xlu1 %506 }
 0x41e   :  { %v509_v19 = vmul.f32 %v2750_v16, %v507_v17  ;;  %v396_v20 = vpop.permute.xlu0 %395 }
 0x41f   :  { %v398_v21 = vmul.f32 %v2752_v18, %v396_v20 }
 0x420   :  { %511 = vrot.lane.b32.xlu1 %v509_v19, %s2865_s4 }
 0x421   :  { %400 = vrot.lane.b32.xlu0 %v398_v21, %s2865_s4 }
 0x492   :  { %v512_v23 = vpop.permute.xlu1 %511 }
 0x493   :  { %v3087_v25 = vadd.f32 %v512_v23, %v504_v22  ;;  %v401_v26 = vpop.permute.xlu0 %400 }
 0x494   :  { %v3089_v27 = vadd.f32 %v401_v26, %v393_v24  ;;  %v156_v24 = vadd.f32 %v3043_v51, %v2965_v13 }
 0x495   :  { %2753 = vtanh.f32 %v3087_v25 }
 0x496   :  { %2755 = vtanh.f32 %v3089_v27 }
 0x49f   :  { %v2754_v28 = vpop.eup %2753 }
 0x4a0   :  { %v2756_v30 = vpop.eup %2755  ;;  %517 = vrot.lane.b32.xlu1 %v2754_v28, %s2864_s25 }
 0x4a1   :  { %406 = vrot.lane.b32.xlu0 %v2756_v30, %s2864_s25 }
 0x512   :  { %v518_v31 = vpop.permute.xlu1 %517 }
 0x513   :  { %v520_v32 = vmul.f32 %v2750_v16, %v518_v31  ;;  %v407_v29 = vpop.permute.xlu0 %406 }
 0x514   :  { %v3095_v33 = vmul.f32 %v2752_v18, %v407_v29 }
 0x515   :  { %522 = vrot.lane.b32.xlu0 %v520_v32, %s2865_s4 }
 0x516   :  { %526 = vrot.lane.b32.xlu1 %v3095_v33, %s2864_s25 }
 0x587   :  { %v523_v34 = vpop.permute.xlu0 %522 }
 0x588   :  { %v527_v35 = vpop.permute.xlu1 %526  ;;  %2378 = vmatmul.mubr.msk.f32.vlgmr.msra.gmra.mrb[10].mxu0 %vm208_vm2, %v523_v34 }
 0x589   :  { %v529_v37 = vsel %vm208_vm2, %v523_v34, %v527_v35  ;;  %2617 = vmatpush3.bf16.msra.mxu0 %v2994_v36  ;;  %2396 = vmatprep.mubr.msk.f32.mxu0 %vm2862_vm1, %v2863_v4 }
 0x58a   :  { %2367 = vmatmul.mubr.msk.f32.vlgmr.msra.gmra.mrb[4].mxu1 %vm312_vm3, %v529_v37  ;;  %2618 = vmatprep.subr.bf16.mxu0 %v2861_v0 }
 0x58b   :  { %2629 = vmatpush3.bf16.msra.mxu1 %v2935_v8  ;;  %2407 = vmatprep.mubr.msk.f32.mxu1 %vm2862_vm1, %v2863_v4 }
 0x58c   :  { %2630 = vmatprep.subr.bf16.mxu1 %v2861_v0 }
 0x58d   :  { %2620 = vmatpush3.bf16.msra.mxu0 %v3005_v39 }
 0x58e   :  { %2621 = vmatprep.subr.bf16.mxu0 %v2861_v0 }
 0x58f   :  { %2632 = vmatpush3.bf16.msra.mxu1 %v2948_v12 }
 0x590   :  { %2633 = vmatprep.subr.bf16.mxu1 %v2861_v0 }
 0x591   :  { %2623 = vmatpush3.bf16.msra.mxu0 %v3023_v44 }
 0x592   :  { %2624 = vmatprep.subr.bf16.mxu0 %v2861_v0 }
 0x595   :  { %2626 = vmatpush3.bf16.msra.mxu0 %v3037_v48 }
 0x596   :  { %2645 = vmatprep.subr.bf16.mxu0 %v2861_v0 }
 0x65b   :  { %v710_v40 = vpop.f32.mrb[10].mxu0 }
 0x65c   :  { %v714_v41 = vadd.f32 %v710_v40, %v151_v38  ;;  %v2379_v42 = vpop.f32.mrb[11].mxu0 }
 0x65d   :  { %v599_v43 = vpop.f32.mrb[4].mxu1 }
 0x65e   :  { %2757 = vtanh.f32 %v714_v41  ;;  %v600_v45 = vadd.f32 %v3079_v60, %v599_v43  ;;  %v2368_v46 = vpop.f32.mrb[5].mxu1  ;;  %v2127_v50 = vmul.f32 -1.442695, %v714_v41 }
 0x660   :  { %2759 = vtanh.f32 %v600_v45  ;;  %v2125_v57 = vmul.f32 -1.442695, %v600_v45 }
 0x661   :  { %2761 = vpow2.f32 %v2127_v50 }
 0x662   :  { %2763 = vpow2.f32 %v2125_v57 }
 0x668   :  { %v2758_v47 = vpop.eup %2757 }
 0x669   :  { %724 = vrot.lane.b32.xlu1 %v2758_v47, %s2864_s25 }
 0x66a   :  { %v2760_v49 = vpop.eup %2759 }
 0x66b   :  { %612 = vrot.lane.b32.xlu0 %v2760_v49, %s2864_s25  ;;  %v2762_v52 = vpop.eup %2761 }
 0x66c   :  { %v2764_v58 = vpop.eup %2763  ;;  %v718_v59 = vadd.f32 1.0, %v2762_v52 }
 0x66d   :  { %v606_v61 = vadd.f32 1.0, %v2764_v58 }
 0x66e   :  { %2765 = vrcp.f32 %v718_v59 }
 0x66f   :  { %2767 = vrcp.f32 %v606_v61 }
 0x678   :  { %v2766_v62 = vpop.eup %2765 }
 0x679   :  { %v2768_v2 = vpop.eup %2767  ;;  %v722_v6 = vmul.f32 %v2766_v62, %v3087_v25 }
 0x67a   :  { %v610_v10 = vmul.f32 %v2768_v2, %v3089_v27 }
 0x6db   :  { %v725_v63 = vpop.permute.xlu1 %724 }
 0x6dc   :  { %v727_v1 = vmul.f32 %v2766_v62, %v725_v63 }
 0x6dd   :  { %v613_v3 = vpop.permute.xlu0 %612 }
 0x6de   :  { %729 = vrot.lane.b32.xlu1 %v727_v1, %s2865_s4  ;;  %v615_v5 = vmul.f32 %v2768_v2, %v613_v3 }
 0x6e0   :  { %617 = vrot.lane.b32.xlu0 %v615_v5, %s2865_s4 }
 0x750   :  { %v730_v7 = vpop.permute.xlu1 %729 }
 0x751   :  { %v3127_v9 = vadd.f32 %v730_v7, %v722_v6 }
 0x752   :  { %v618_v11 = vpop.permute.xlu0 %617 }
 0x753   :  { %2769 = vtanh.f32 %v3127_v9  ;;  %v3131_v14 = vadd.f32 %v618_v11, %v610_v10 }
 0x755   :  { %2771 = vtanh.f32 %v3131_v14 }
 0x75d   :  { %v2770_v15 = vpop.eup %2769 }
 0x75e   :  { %735 = vrot.lane.b32.xlu1 %v2770_v15, %s2864_s25 }
 0x75f   :  { %v2772_v16 = vpop.eup %2771 }
 0x760   :  { %623 = vrot.lane.b32.xlu0 %v2772_v16, %s2864_s25 }
 0x7d0   :  { %v736_v17 = vpop.permute.xlu1 %735 }
 0x7d1   :  { %v738_v18 = vmul.f32 %v2766_v62, %v736_v17 }
 0x7d2   :  { %v624_v19 = vpop.permute.xlu0 %623 }
 0x7d3   :  { %740 = vrot.lane.b32.xlu0 %v738_v18, %s2865_s4  ;;  %v3137_v20 = vmul.f32 %v2768_v2, %v624_v19 }
 0x7d5   :  { %744 = vrot.lane.b32.xlu1 %v3137_v20, %s2864_s25 }
 0x845   :  { %v741_v21 = vpop.permute.xlu0 %740 }
 0x846   :  { %2408 = vmatmul.mubr.msk.f32.vlgmr.msra.gmra.mrb[6].mxu1 %vm208_vm2, %v741_v21 }
 0x847   :  { %2635 = vmatpush3.bf16.msra.mxu1 %v2994_v36  ;;  %2426 = vmatprep.mubr.msk.f32.mxu1 %vm2862_vm1, %v2863_v4  ;;  %v745_v22 = vpop.permute.xlu1 %744 }
 0x848   :  { %2636 = vmatprep.subr.bf16.mxu1 %v2861_v0  ;;  %v747_v23 = vsel %vm208_vm2, %v741_v21, %v745_v22 }
 0x849   :  { %2397 = vmatmul.mubr.msk.f32.vlgmr.msra.gmra.mrb[12].mxu0 %vm312_vm3, %v747_v23 }
 0x84a   :  { %2647 = vmatpush3.bf16.msra.mxu0 %v2935_v8  ;;  %2437 = vmatprep.mubr.msk.f32.mxu0 %vm2862_vm1, %v2863_v4 }
 0x84b   :  { %2638 = vmatpush3.bf16.msra.mxu1 %v3005_v39  ;;  %2648 = vmatprep.subr.bf16.mxu0 %v2861_v0 }
 0x84c   :  { %2639 = vmatprep.subr.bf16.mxu1 %v2861_v0 }
 0x84e   :  { %2650 = vmatpush3.bf16.msra.mxu0 %v2948_v12 }
 0x84f   :  { %2641 = vmatpush3.bf16.msra.mxu1 %v3023_v44  ;;  %2651 = vmatprep.subr.bf16.mxu0 %v2861_v0 }
 0x850   :  { %2642 = vmatprep.subr.bf16.mxu1 %v2861_v0 }
 0x853   :  { %2644 = vmatpush3.bf16.msra.mxu1 %v3037_v48 }
 0x854   :  { %2663 = vmatprep.subr.bf16.mxu1 %v2861_v0 }
 0x919   :  { %v928_v25 = vpop.f32.mrb[6].mxu1 }
 0x91a   :  { %v932_v26 = vadd.f32 %v928_v25, %v156_v24  ;;  %v2409_v27 = vpop.f32.mrb[7].mxu1 }
 0x91c   :  { %2773 = vtanh.f32 %v932_v26  ;;  %v817_v28 = vpop.f32.mrb[12].mxu0  ;;  %v2131_v34 = vmul.f32 -1.442695, %v932_v26 }
 0x91d   :  { %v818_v30 = vadd.f32 %v3079_v60, %v817_v28  ;;  %v2398_v31 = vpop.f32.mrb[13].mxu0 }
 0x91f   :  { %2775 = vtanh.f32 %v818_v30  ;;  %v2129_v35 = vmul.f32 -1.442695, %v818_v30 }
 0x920   :  { %2777 = vpow2.f32 %v2131_v34 }
 0x921   :  { %2779 = vpow2.f32 %v2129_v35 }
 0x926   :  { %v2774_v32 = vpop.eup %2773 }
 0x927   :  { %942 = vrot.lane.b32.xlu1 %v2774_v32, %s2864_s25 }
 0x929   :  { %v2776_v29 = vpop.eup %2775 }
 0x92a   :  { %830 = vrot.lane.b32.xlu0 %v2776_v29, %s2864_s25  ;;  %v2778_v51 = vpop.eup %2777 }
 0x92b   :  { %v936_v37 = vadd.f32 1.0, %v2778_v51  ;;  %v2780_v38 = vpop.eup %2779 }
 0x92c   :  { %v824_v40 = vadd.f32 1.0, %v2780_v38 }
 0x92d   :  { %2781 = vrcp.f32 %v936_v37 }
 0x92e   :  { %2783 = vrcp.f32 %v824_v40 }
 0x937   :  { %v2782_v41 = vpop.eup %2781 }
 0x938   :  { %v2784_v45 = vpop.eup %2783  ;;  %v940_v49 = vmul.f32 %v2782_v41, %v3127_v9  ;;  %v161_v9 = vadd.f32 %v2965_v13, %v3049_v54 }
 0x939   :  { %v828_v52 = vmul.f32 %v2784_v45, %v3131_v14 }
 0x999   :  { %v943_v42 = vpop.permute.xlu1 %942 }
 0x99a   :  { %v945_v43 = vmul.f32 %v2782_v41, %v943_v42 }
 0x99c   :  { %947 = vrot.lane.b32.xlu1 %v945_v43, %s2865_s4  ;;  %v831_v46 = vpop.permute.xlu0 %830 }
 0x99d   :  { %v833_v47 = vmul.f32 %v2784_v45, %v831_v46 }
 0x99f   :  { %835 = vrot.lane.b32.xlu0 %v833_v47, %s2865_s4 }
 0xa0e   :  { %v948_v50 = vpop.permute.xlu1 %947 }
 0xa0f   :  { %v3168_v57 = vadd.f32 %v948_v50, %v940_v49 }
 0xa11   :  { %2785 = vtanh.f32 %v3168_v57  ;;  %v836_v58 = vpop.permute.xlu0 %835 }
 0xa12   :  { %v3172_v59 = vadd.f32 %v836_v58, %v828_v52 }
 0xa14   :  { %2787 = vtanh.f32 %v3172_v59 }
 0xa1b   :  { %v2786_v61 = vpop.eup %2785 }
 0xa1c   :  { %953 = vrot.lane.b32.xlu1 %v2786_v61, %s2864_s25 }
 0xa1e   :  { %v2788_v62 = vpop.eup %2787 }
 0xa1f   :  { %841 = vrot.lane.b32.xlu0 %v2788_v62, %s2864_s25 }
 0xa8e   :  { %v954_v63 = vpop.permute.xlu1 %953 }
 0xa8f   :  { %v956_v1 = vmul.f32 %v2782_v41, %v954_v63 }
 0xa91   :  { %958 = vrot.lane.b32.xlu0 %v956_v1, %s2865_s4  ;;  %v842_v2 = vpop.permute.xlu0 %841 }
 0xa92   :  { %v3178_v3 = vmul.f32 %v2784_v45, %v842_v2 }
 0xa94   :  { %962 = vrot.lane.b32.xlu1 %v3178_v3, %s2864_s25 }
 0xb03   :  { %v959_v5 = vpop.permute.xlu0 %958 }
 0xb04   :  { %2438 = vmatmul.mubr.msk.f32.vlgmr.msra.gmra.mrb[14].mxu0 %vm208_vm2, %v959_v5 }
 0xb05   :  { %2653 = vmatpush3.bf16.msra.mxu0 %v2994_v36  ;;  %2456 = vmatprep.mubr.msk.f32.mxu0 %vm2862_vm1, %v2863_v4 }
 0xb06   :  { %2654 = vmatprep.subr.bf16.mxu0 %v2861_v0  ;;  %v963_v6 = vpop.permute.xlu1 %962 }
 0xb07   :  { %v965_v7 = vsel %vm208_vm2, %v959_v5, %v963_v6 }
 0xb08   :  { %2427 = vmatmul.mubr.msk.f32.vlgmr.msra.gmra.mrb[8].mxu1 %vm312_vm3, %v965_v7 }
 0xb09   :  { %2656 = vmatpush3.bf16.msra.mxu0 %v3005_v39  ;;  %2665 = vmatpush3.bf16.msra.mxu1 %v2935_v8 }
 0xb0a   :  { %2657 = vmatprep.subr.bf16.mxu0 %v2861_v0  ;;  %2666 = vmatprep.subr.bf16.mxu1 %v2861_v0 }
 0xb0b   :  { %2467 = vmatprep.mubr.msk.f32.mxu1 %vm2862_vm1, %v2863_v4 }
 0xb0d   :  { %2659 = vmatpush3.bf16.msra.mxu0 %v3023_v44  ;;  %2668 = vmatpush3.bf16.msra.mxu1 %v2948_v12 }
 0xb0e   :  { %2660 = vmatprep.subr.bf16.mxu0 %v2861_v0  ;;  %2669 = vmatprep.subr.bf16.mxu1 %v2861_v0 }
 0xb11   :  { %2662 = vmatpush3.bf16.msra.mxu0 %v3037_v48 }
 0xb12   :  { %2681 = vmatprep.subr.bf16.mxu0 %v2861_v0 }
 0xbd7   :  { %v1146_v10 = vpop.f32.mrb[14].mxu0 }
 0xbd8   :  { %v1150_v11 = vadd.f32 %v1146_v10, %v161_v9  ;;  %v2439_v14 = vpop.f32.mrb[15].mxu0 }
 0xbda   :  { %2789 = vtanh.f32 %v1150_v11  ;;  %v2135_v21 = vmul.f32 -1.442695, %v1150_v11 }
 0xbdb   :  { %v1035_v15 = vpop.f32.mrb[8].mxu1 }
 0xbdc   :  { %v1036_v16 = vadd.f32 %v3079_v60, %v1035_v15  ;;  %v2428_v17 = vpop.f32.mrb[9].mxu1 }
 0xbde   :  { %2791 = vtanh.f32 %v1036_v16  ;;  %v2133_v22 = vmul.f32 -1.442695, %v1036_v16 }
 0xbdf   :  { %2793 = vpow2.f32 %v2135_v21 }
 0xbe0   :  { %2795 = vpow2.f32 %v2133_v22 }
 0xbe4   :  { %v2790_v18 = vpop.eup %2789 }
 0xbe5   :  { %1160 = vrot.lane.b32.xlu1 %v2790_v18, %s2864_s25 }
 0xbe8   :  { %v2792_v19 = vpop.eup %2791 }
 0xbe9   :  { %1048 = vrot.lane.b32.xlu0 %v2792_v19, %s2864_s25  ;;  %v2794_v54 = vpop.eup %2793 }
 0xbea   :  { %v1154_v23 = vadd.f32 1.0, %v2794_v54  ;;  %v2796_v24 = vpop.eup %2795 }
 0xbeb   :  { %v1042_v25 = vadd.f32 1.0, %v2796_v24 }
 0xbec   :  { %2797 = vrcp.f32 %v1154_v23 }
 0xbed   :  { %2799 = vrcp.f32 %v1042_v25 }
 0xbf6   :  { %v2798_v26 = vpop.eup %2797 }
 0xbf7   :  { %v2800_v30 = vpop.eup %2799  ;;  %v1158_v29 = vmul.f32 %v2798_v26, %v3168_v57  ;;  %v166_v57 = vadd.f32 %v3047_v53, %v2965_v13 }
 0xbf8   :  { %v1046_v51 = vmul.f32 %v2800_v30, %v3172_v59 }
 0xc57   :  { %v1161_v27 = vpop.permute.xlu1 %1160 }
 0xc58   :  { %v1163_v28 = vmul.f32 %v2798_v26, %v1161_v27 }
 0xc5a   :  { %1165 = vrot.lane.b32.xlu1 %v1163_v28, %s2865_s4 }
 0xc5b   :  { %v1049_v31 = vpop.permute.xlu0 %1048 }
 0xc5c   :  { %v1051_v32 = vmul.f32 %v2800_v30, %v1049_v31 }
 0xc5e   :  { %1053 = vrot.lane.b32.xlu0 %v1051_v32, %s2865_s4 }
 0xccc   :  { %v1166_v34 = vpop.permute.xlu1 %1165 }
 0xccd   :  { %v3209_v35 = vadd.f32 %v1166_v34, %v1158_v29 }
 0xccf   :  { %2801 = vtanh.f32 %v3209_v35 }
 0xcd0   :  { %v1054_v37 = vpop.permute.xlu0 %1053 }
 0xcd1   :  { %v3213_v38 = vadd.f32 %v1054_v37, %v1046_v51 }
 0xcd3   :  { %2803 = vtanh.f32 %v3213_v38 }
 0xcd9   :  { %v2802_v40 = vpop.eup %2801 }
 0xcda   :  { %1171 = vrot.lane.b32.xlu1 %v2802_v40, %s2864_s25 }
 0xcdd   :  { %v2804_v41 = vpop.eup %2803 }
 0xcde   :  { %1059 = vrot.lane.b32.xlu0 %v2804_v41, %s2864_s25 }
 0xd4c   :  { %v1172_v42 = vpop.permute.xlu1 %1171 }
 0xd4d   :  { %v1174_v43 = vmul.f32 %v2798_v26, %v1172_v42 }
 0xd4f   :  { %1176 = vrot.lane.b32.xlu0 %v1174_v43, %s2865_s4 }
 0xd50   :  { %v1060_v45 = vpop.permute.xlu0 %1059 }
 0xd51   :  { %v3219_v46 = vmul.f32 %v2800_v30, %v1060_v45 }
 0xd53   :  { %1180 = vrot.lane.b32.xlu1 %v3219_v46, %s2864_s25 }
 0xdc1   :  { %v1177_v47 = vpop.permute.xlu0 %1176 }
 0xdc2   :  { %2468 = vmatmul.mubr.msk.f32.vlgmr.msra.gmra.mrb[10].mxu1 %vm208_vm2, %v1177_v47 }
 0xdc3   :  { %2671 = vmatpush3.bf16.msra.mxu1 %v2994_v36  ;;  %2486 = vmatprep.mubr.msk.f32.mxu1 %vm2862_vm1, %v2863_v4 }
 0xdc4   :  { %2672 = vmatprep.subr.bf16.mxu1 %v2861_v0 }
 0xdc5   :  { %v1181_v49 = vpop.permute.xlu1 %1180 }
 0xdc6   :  { %v1183_v50 = vsel %vm208_vm2, %v1177_v47, %v1181_v49 }
 0xdc7   :  { %2674 = vmatpush3.bf16.msra.mxu1 %v3005_v39  ;;  %2457 = vmatmul.mubr.msk.f32.vlgmr.msra.gmra.mrb[16].mxu0 %vm312_vm3, %v1183_v50 }
 0xdc8   :  { %2675 = vmatprep.subr.bf16.mxu1 %v2861_v0  ;;  %2683 = vmatpush3.bf16.msra.mxu0 %v2935_v8 }
 0xdc9   :  { %2497 = vmatprep.mubr.msk.f32.mxu0 %vm2862_vm1, %v2863_v4  ;;  %2684 = vmatprep.subr.bf16.mxu0 %v2861_v0 }
 0xdcb   :  { %2677 = vmatpush3.bf16.msra.mxu1 %v3023_v44 }
 0xdcc   :  { %2678 = vmatprep.subr.bf16.mxu1 %v2861_v0  ;;  %2686 = vmatpush3.bf16.msra.mxu0 %v2948_v12 }
 0xdcd   :  { %2687 = vmatprep.subr.bf16.mxu0 %v2861_v0 }
 0xdcf   :  { %2680 = vmatpush3.bf16.msra.mxu1 %v3037_v48 }
 0xdd0   :  { %2699 = vmatprep.subr.bf16.mxu1 %v2861_v0 }
 0xe95   :  { %v1364_v52 = vpop.f32.mrb[10].mxu1 }
 0xe96   :  { %v1368_v58 = vadd.f32 %v1364_v52, %v166_v57  ;;  %v2469_v59 = vpop.f32.mrb[11].mxu1 }
 0xe98   :  { %2805 = vtanh.f32 %v1368_v58  ;;  %v2139_v5 = vmul.f32 -1.442695, %v1368_v58 }
 0xe9a   :  { %v1253_v61 = vpop.f32.mrb[16].mxu0 }
 0xe9b   :  { %v1254_v62 = vadd.f32 %v3079_v60, %v1253_v61  ;;  %v2458_v63 = vpop.f32.mrb[17].mxu0 }
 0xe9d   :  { %2807 = vtanh.f32 %v1254_v62  ;;  %v2137_v6 = vmul.f32 -1.442695, %v1254_v62 }
 0xe9e   :  { %2809 = vpow2.f32 %v2139_v5 }
 0xe9f   :  { %2811 = vpow2.f32 %v2137_v6 }
 0xea2   :  { %v2806_v1 = vpop.eup %2805 }
 0xea3   :  { %1378 = vrot.lane.b32.xlu1 %v2806_v1, %s2864_s25 }
 0xea7   :  { %v2808_v2 = vpop.eup %2807 }
 0xea8   :  { %1266 = vrot.lane.b32.xlu0 %v2808_v2, %s2864_s25  ;;  %v2810_v53 = vpop.eup %2809 }
 0xea9   :  { %v1372_v7 = vadd.f32 1.0, %v2810_v53  ;;  %v2812_v9 = vpop.eup %2811 }
 0xeaa   :  { %v1260_v10 = vadd.f32 1.0, %v2812_v9 }
 0xeab   :  { %2813 = vrcp.f32 %v1372_v7 }
 0xeac   :  { %2815 = vrcp.f32 %v1260_v10 }
 0xeb5   :  { %v2814_v11 = vpop.eup %2813 }
 0xeb6   :  { %v2816_v16 = vpop.eup %2815  ;;  %v1376_v19 = vmul.f32 %v2814_v11, %v3209_v35  ;;  %v171_v35 = vadd.f32 %v2965_v13, %v3053_v56 }
 0xeb7   :  { %v1264_v54 = vmul.f32 %v2816_v16, %v3213_v38 }
 0xf15   :  { %v1379_v14 = vpop.permute.xlu1 %1378 }
 0xf16   :  { %v1381_v15 = vmul.f32 %v2814_v11, %v1379_v14 }
 0xf18   :  { %1383 = vrot.lane.b32.xlu1 %v1381_v15, %s2865_s4 }
 0xf1a   :  { %v1267_v17 = vpop.permute.xlu0 %1266 }
 0xf1b   :  { %v1269_v18 = vmul.f32 %v2816_v16, %v1267_v17 }
 0xf1d   :  { %1271 = vrot.lane.b32.xlu0 %v1269_v18, %s2865_s4 }
 0xf8a   :  { %v1384_v21 = vpop.permute.xlu1 %1383 }
 0xf8b   :  { %v3250_v22 = vadd.f32 %v1384_v21, %v1376_v19 }
 0xf8d   :  { %2817 = vtanh.f32 %v3250_v22 }
 0xf8f   :  { %v1272_v23 = vpop.permute.xlu0 %1271 }
 0xf90   :  { %v3254_v24 = vadd.f32 %v1272_v23, %v1264_v54 }
 0xf92   :  { %2819 = vtanh.f32 %v3254_v24 }
 0xf97   :  { %v2818_v25 = vpop.eup %2817 }
 0xf98   :  { %1389 = vrot.lane.b32.xlu1 %v2818_v25, %s2864_s25 }
 0xf9c   :  { %v2820_v26 = vpop.eup %2819 }
 0xf9d   :  { %1277 = vrot.lane.b32.xlu0 %v2820_v26, %s2864_s25 }
0x100a   :  { %v1390_v27 = vpop.permute.xlu1 %1389 }
0x100b   :  { %v1392_v28 = vmul.f32 %v2814_v11, %v1390_v27 }
0x100d   :  { %1394 = vrot.lane.b32.xlu0 %v1392_v28, %s2865_s4 }
0x100f   :  { %v1278_v30 = vpop.permute.xlu0 %1277 }
0x1010   :  { %v3260_v31 = vmul.f32 %v2816_v16, %v1278_v30 }
0x1012   :  { %1398 = vrot.lane.b32.xlu1 %v3260_v31, %s2864_s25 }
0x107f   :  { %v1395_v32 = vpop.permute.xlu0 %1394 }
0x1080   :  { %2498 = vmatmul.mubr.msk.f32.vlgmr.msra.gmra.mrb[18].mxu0 %vm208_vm2, %v1395_v32 }
0x1081   :  { %2689 = vmatpush3.bf16.msra.mxu0 %v2994_v36  ;;  %2516 = vmatprep.mubr.msk.f32.mxu0 %vm2862_vm1, %v2863_v4 }
0x1082   :  { %2690 = vmatprep.subr.bf16.mxu0 %v2861_v0 }
0x1084   :  { %v1399_v29 = vpop.permute.xlu1 %1398 }
0x1085   :  { %2692 = vmatpush3.bf16.msra.mxu0 %v3005_v39  ;;  %v1401_v34 = vsel %vm208_vm2, %v1395_v32, %v1399_v29 }
0x1086   :  { %2693 = vmatprep.subr.bf16.mxu0 %v2861_v0  ;;  %2487 = vmatmul.mubr.msk.f32.vlgmr.msra.gmra.mrb[12].mxu1 %vm312_vm3, %v1401_v34 }
0x1087   :  { %2701 = vmatpush3.bf16.msra.mxu1 %v2935_v8  ;;  %2527 = vmatprep.mubr.msk.f32.mxu1 %vm2862_vm1, %v2863_v4 }
0x1088   :  { %2702 = vmatprep.subr.bf16.mxu1 %v2861_v0 }
0x1089   :  { %2695 = vmatpush3.bf16.msra.mxu0 %v3023_v44 }
0x108a   :  { %2696 = vmatprep.subr.bf16.mxu0 %v2861_v0 }
0x108b   :  { %2704 = vmatpush3.bf16.msra.mxu1 %v2948_v12 }
0x108c   :  { %2705 = vmatprep.subr.bf16.mxu1 %v2861_v0 }
0x108d   :  { %2698 = vmatpush3.bf16.msra.mxu0 %v3037_v48 }
0x1153   :  { %v1582_v51 = vpop.f32.mrb[18].mxu0 }
0x1154   :  { %v1586_v8 = vadd.f32 %v1582_v51, %v171_v35  ;;  %v2499_v37 = vpop.f32.mrb[19].mxu0 }
0x1156   :  { %2821 = vtanh.f32 %v1586_v8  ;;  %v2143_v43 = vmul.f32 -1.442695, %v1586_v8 }
0x1159   :  { %v1471_v38 = vpop.f32.mrb[12].mxu1 }
0x115a   :  { %v1472_v40 = vadd.f32 %v3079_v60, %v1471_v38  ;;  %v2488_v41 = vpop.f32.mrb[13].mxu1 }
0x115c   :  { %2823 = vtanh.f32 %v1472_v40  ;;  %v2141_v45 = vmul.f32 -1.442695, %v1472_v40 }
0x115d   :  { %2825 = vpow2.f32 %v2143_v43 }
0x115e   :  { %2827 = vpow2.f32 %v2141_v45 }
0x1160   :  { %v2822_v42 = vpop.eup %2821 }
0x1161   :  { %1596 = vrot.lane.b32.xlu1 %v2822_v42, %s2864_s25 }
0x1166   :  { %v2824_v12 = vpop.eup %2823 }
0x1167   :  { %1484 = vrot.lane.b32.xlu0 %v2824_v12, %s2864_s25  ;;  %v2826_v56 = vpop.eup %2825 }
0x1168   :  { %v1590_v47 = vadd.f32 1.0, %v2826_v56  ;;  %v2828_v49 = vpop.eup %2827 }
0x1169   :  { %v1478_v50 = vadd.f32 1.0, %v2828_v49 }
0x116a   :  { %2829 = vrcp.f32 %v1590_v47 }
0x116b   :  { %2831 = vrcp.f32 %v1478_v50  ;;  %v2866_v50 = vmov 0  }
0x116c   :  { %2731 = vset.pattern.permute.xlu0 %v2866_v50  ;;  %2732 = vset.pattern.permute.xlu1 %v2866_v50 }
0x1174   :  { %v2830_v57 = vpop.eup %2829 }
0x1175   :  { %v2832_v59 = vpop.eup %2831  ;;  %v1594_v63 = vmul.f32 %v2830_v57, %v3250_v22 }
0x1176   :  { %v1482_v5 = vmul.f32 %v2832_v59, %v3254_v24 }
0x11d3   :  { %v1597_v52 = vpop.permute.xlu1 %1596 }
0x11d4   :  { %v1599_v58 = vmul.f32 %v2830_v57, %v1597_v52 }
0x11d6   :  { %1601 = vrot.lane.b32.xlu1 %v1599_v58, %s2865_s4 }
0x11d9   :  { %v1485_v61 = vpop.permute.xlu0 %1484 }
0x11da   :  { %v1487_v62 = vmul.f32 %v2832_v59, %v1485_v61 }
0x11dc   :  { %1489 = vrot.lane.b32.xlu0 %v1487_v62, %s2865_s4 }
0x1248   :  { %v1602_v1 = vpop.permute.xlu1 %1601 }
0x1249   :  { %v1604_v2 = vadd.f32 %v1602_v1, %v1594_v63 }
0x124b   :  { %2833 = vtanh.f32 %v1604_v2 }
0x124e   :  { %v1490_v6 = vpop.permute.xlu0 %1489 }
0x124f   :  { %v1492_v53 = vadd.f32 %v1490_v6, %v1482_v5 }
0x1251   :  { %2835 = vtanh.f32 %v1492_v53 }
0x1255   :  { %v2834_v7 = vpop.eup %2833 }
0x1256   :  { %1607 = vrot.lane.b32.xlu1 %v2834_v7, %s2864_s25 }
0x125b   :  { %v2836_v9 = vpop.eup %2835 }
0x125c   :  { %1495 = vrot.lane.b32.xlu0 %v2836_v9, %s2864_s25 }
0x12c8   :  { %v1608_v10 = vpop.permute.xlu1 %1607 }
0x12c9   :  { %v1610_v11 = vmul.f32 %v2830_v57, %v1608_v10 }
0x12cb   :  { %1612 = vrot.lane.b32.xlu0 %v1610_v11, %s2865_s4 }
0x12ce   :  { %v1496_v14 = vpop.permute.xlu0 %1495 }
0x12cf   :  { %v3294_v15 = vmul.f32 %v2832_v59, %v1496_v14  ;;  %v187_v59 = vld [vmem:[%s3426_s1] sm:$0xff] }
0x12d0   :  { %vm410_vm4 = vcmp.gt.s32.totalorder %v187_v59, 0  ;;  %vm1063_vm5 = vcmp.gt.s32.totalorder %v187_v59, 3  ;;  %vm1499_vm6 = vcmp.gt.s32.totalorder %v187_v59, 5  ;;  %vm1935_vm7 = vcmp.gt.s32.totalorder %v187_v59, 7 }
0x12d1   :  { %1616 = vrot.lane.b32.xlu1 %v3294_v15, %s2864_s25  ;;  %v411_v62 = vsel %vm410_vm4, 1, %v2866_v50  ;;  %v1064_v63 = vsel %vm1063_vm5, 1, %v2866_v50  ;;  %v1500_v1 = vsel %vm1499_vm6, 1, %v2866_v50  ;;  %vm627_vm8 = vcmp.gt.s32.totalorder %v187_v59, 1 }
0x12d2   :  { %v628_v10 = vsel %vm627_vm8, 1, %v2866_v50  ;;  %vm845_vm9 = vcmp.gt.s32.totalorder %v187_v59, 2  ;;  %vm1281_vm10 = vcmp.gt.s32.totalorder %v187_v59, 4  ;;  %vm1717_vm11 = vcmp.gt.s32.totalorder %v187_v59, 6 }
0x12d3   :  { %v846_v11 = vsel %vm845_vm9, 1, %v2866_v50  ;;  %v1282_v14 = vsel %vm1281_vm10, 1, %v2866_v50  ;;  %vm2096_vm5 = vcmask 64512  }
0x133d   :  { %v1613_v16 = vpop.permute.xlu0 %1612 }
0x133e   :  { %2528 = vmatmul.mubr.msk.f32.vlgmr.msra.gmra.mrb[14].mxu1 %vm208_vm2, %v1613_v16 }
0x133f   :  { %2707 = vmatpush3.bf16.msra.mxu1 %v2994_v36  ;;  %2546 = vmatprep.mubr.msk.f32.mxu1 %vm2862_vm1, %v2863_v4  ;;  %v176_v4 = vadd.f32 %v3051_v55, %v2965_v13 }
0x1340   :  { %2708 = vmatprep.subr.bf16.mxu1 %v2861_v0 }
0x1343   :  { %2710 = vmatpush3.bf16.msra.mxu1 %v3005_v39  ;;  %v1617_v17 = vpop.permute.xlu1 %1616 }
0x1344   :  { %2711 = vmatprep.subr.bf16.mxu1 %v2861_v0  ;;  %v1619_v18 = vsel %vm208_vm2, %v1613_v16, %v1617_v17  ;;  %v1718_v16 = vsel %vm1717_vm11, 1, %v2866_v50 }
0x1345   :  { %2517 = vmatmul.mubr.msk.f32.vlgmr.msra.gmra.mrb[20].mxu0 %vm312_vm3, %v1619_v18 }
0x1347   :  { %2713 = vmatpush3.bf16.msra.mxu1 %v3023_v44 }
0x1348   :  { %2714 = vmatprep.subr.bf16.mxu1 %v2861_v0 }
0x134b   :  { %2716 = vmatpush3.bf16.msra.mxu1 %v3037_v48 }
0x1411   :  { %v1800_v36 = vpop.f32.mrb[14].mxu1 }
0x1412   :  { %v1804_v19 = vadd.f32 %v1800_v36, %v176_v4  ;;  %v2529_v21 = vpop.f32.mrb[15].mxu1 }
0x1414   :  { %2837 = vtanh.f32 %v1804_v19  ;;  %v2147_v0 = vmul.f32 -1.442695, %v1804_v19 }
0x1418   :  { %v1689_v39 = vpop.f32.mrb[20].mxu0 }
0x1419   :  { %v1690_v22 = vadd.f32 %v3079_v60, %v1689_v39  ;;  %v2518_v54 = vpop.f32.mrb[21].mxu0  ;;  %v1956_v39 = vld [vmem:[%s3427_s7] sm:$0xff] }
0x141b   :  { %2839 = vtanh.f32 %v1690_v22  ;;  %v2145_v48 = vmul.f32 -1.442695, %v1690_v22  ;;  %v1957_v22 = vld [vmem:[%s3427_s7 + $0x8] sm:$0xff] }
0x141c   :  { %2841 = vpow2.f32 %v2147_v0  ;;  %v2717_v54 = vpack.c.bf16 %v1957_v22, %v1956_v39 }
0x141d   :  { %2843 = vpow2.f32 %v2145_v48 }
0x141e   :  { %v2838_v23 = vpop.eup %2837  ;;  %2718 = vmatprep.subr.bf16.mxu0 %v2717_v54 }
0x141f   :  { %1814 = vrot.lane.b32.xlu1 %v2838_v23, %s2864_s25  ;;  %2720 = vmatpush3.bf16.msra.mxu0 %v2717_v54  ;;  %v1958_v23 = vld [vmem:[%s3427_s7 + $0x10] sm:$0xff] }
0x1425   :  { %v2840_v44 = vpop.eup %2839 }
0x1426   :  { %1702 = vrot.lane.b32.xlu0 %v2840_v44, %s2864_s25  ;;  %v2842_v13 = vpop.eup %2841  ;;  %v1959_v44 = vld [vmem:[%s3427_s7 + $0x18] sm:$0xff] }
0x1427   :  { %v1808_v55 = vadd.f32 1.0, %v2842_v13  ;;  %v2844_v24 = vpop.eup %2843  ;;  %v2721_v0 = vpack.c.bf16 %v1959_v44, %v1958_v23 }
0x1428   :  { %v1696_v25 = vadd.f32 1.0, %v2844_v24 }
0x1429   :  { %2845 = vrcp.f32 %v1808_v55  ;;  %2722 = vmatprep.subr.bf16.mxu0 %v2721_v0 }
0x142a   :  { %2847 = vrcp.f32 %v1696_v25  ;;  %2724 = vmatpush3.bf16.msra.mxu0 %v2721_v0 }
0x1433   :  { %v2846_v26 = vpop.eup %2845 }
0x1434   :  { %v2848_v30 = vpop.eup %2847  ;;  %v1812_v34 = vmul.f32 %v2846_v26, %v1604_v2 }
0x1435   :  { %v1700_v8 = vmul.f32 %v2848_v30, %v1492_v53 }
0x1491   :  { %v1815_v27 = vpop.permute.xlu1 %1814 }
0x1492   :  { %v1817_v28 = vmul.f32 %v2846_v26, %v1815_v27 }
0x1494   :  { %1819 = vrot.lane.b32.xlu1 %v1817_v28, %s2865_s4 }
0x1498   :  { %v1703_v32 = vpop.permute.xlu0 %1702 }
0x1499   :  { %v1705_v29 = vmul.f32 %v2848_v30, %v1703_v32 }
0x149b   :  { %1707 = vrot.lane.b32.xlu0 %v1705_v29, %s2865_s4 }
0x1506   :  { %v1820_v35 = vpop.permute.xlu1 %1819 }
0x1507   :  { %v1822_v51 = vadd.f32 %v1820_v35, %v1812_v34 }
0x1509   :  { %2849 = vtanh.f32 %v1822_v51 }
0x150d   :  { %v1708_v37 = vpop.permute.xlu0 %1707 }
0x150e   :  { %v3317_v38 = vadd.f32 %v1708_v37, %v1700_v8 }
0x1510   :  { %2851 = vtanh.f32 %v3317_v38 }
0x1513   :  { %v2850_v40 = vpop.eup %2849 }
0x1514   :  { %1825 = vrot.lane.b32.xlu1 %v2850_v40, %s2864_s25 }
0x151a   :  { %v2852_v41 = vpop.eup %2851 }
0x151b   :  { %1713 = vrot.lane.b32.xlu0 %v2852_v41, %s2864_s25 }
0x1586   :  { %v1826_v42 = vpop.permute.xlu1 %1825 }
0x1587   :  { %v1828_v12 = vmul.f32 %v2846_v26, %v1826_v42 }
0x1589   :  { %1830 = vrot.lane.b32.xlu0 %v1828_v12, %s2865_s4 }
0x158d   :  { %v1714_v43 = vpop.permute.xlu0 %1713 }
0x158e   :  { %v3323_v45 = vmul.f32 %v2848_v30, %v1714_v43 }
0x1590   :  { %1834 = vrot.lane.b32.xlu1 %v3323_v45, %s2864_s25 }
0x15fb   :  { %v1831_v56 = vpop.permute.xlu0 %1830 }
0x1602   :  { %v1835_v47 = vpop.permute.xlu1 %1834 }
0x1603   :  { %v1837_v49 = vsel %vm208_vm2, %v1831_v56, %v1835_v47 }
0x1604   :  { %2547 = vmatmul.mubr.msk.f32.vlgmr.msra.gmra.mrb[16].mxu1 %vm312_vm3, %v1837_v49 }
0x16d7   :  { %v1907_v57 = vpop.f32.mrb[16].mxu1 }
0x16d8   :  { %v1908_v52 = vadd.f32 %v3079_v60, %v1907_v57  ;;  %v2548_v58 = vpop.f32.mrb[17].mxu1  ;;  %v1936_v60 = vsel %vm1935_vm7, 1, %v2866_v50  ;;  %v2150_v50 = vld [vmem:[%s3428_s8] ss:$0 sm:$0xff] }
0x16da   :  { %2853 = vtanh.f32 %v1908_v52  ;;  %v2149_v2 = vmul.f32 -1.442695, %v1908_v52 }
0x16dc   :  { %2855 = vpow2.f32 %v2149_v2 }
0x16e4   :  { %v2854_v61 = vpop.eup %2853 }
0x16e5   :  { %1920 = vrot.lane.b32.xlu0 %v2854_v61, %s2864_s25 }
0x16e6   :  { %v2856_v5 = vpop.eup %2855 }
0x16e7   :  { %v1914_v6 = vadd.f32 1.0, %v2856_v5 }
0x16e9   :  { %413 = vperm.xlu0 %2731, %v411_v62   ;;  %2857 = vrcp.f32 %v1914_v6 }
0x16ed   :  { %1066 = vperm.xlu0 %2731, %v1064_v63  }
0x16f1   :  { %1502 = vperm.xlu0 %2731, %v1500_v1  }
0x16f3   :  { %v3334_v53 = vpop.eup %2857 }
0x16f4   :  { %v1918_v4 = vmul.f32 %v3334_v53, %v3317_v38 }
0x16f5   :  { %1938 = vperm.xlu0 %2731, %v1936_v60  }
0x1757   :  { %v1921_v7 = vpop.permute.xlu0 %1920 }
0x1758   :  { %v1923_v9 = vmul.f32 %v3334_v53, %v1921_v7 }
0x175a   :  { %1925 = vrot.lane.b32.xlu1 %v1923_v9, %s2865_s4 }
0x175e   :  { %630 = vperm.xlu1 %2732, %v628_v10  }
0x1762   :  { %848 = vperm.xlu1 %2732, %v846_v11  }
0x1766   :  { %1284 = vperm.xlu1 %2732, %v1282_v14  }
0x1768   :  { %v414_v17 = vpop.permute.xlu0 %413 }
0x1769   :  { %vm415_vm12 = vcmp.eq.s32.totalorder %v414_v17, 1 }
0x176a   :  { %v416_v18 = vsel %vm415_vm12, %v3095_v33, 3.0  ;;  %1720 = vperm.xlu1 %2732, %v1718_v16  }
0x176b   :  { %418 = vrot.lane.b32.xlu0 %v416_v18, %s2865_s4 }
0x176c   :  { %v1067_v19 = vpop.permute.xlu0 %1066 }
0x176d   :  { %vm1068_vm14 = vcmp.eq.s32.totalorder %v1067_v19, 1 }
0x176e   :  { %v1069_v27 = vsel %vm1068_vm14, %v3219_v46, 3.0 }
0x1770   :  { %v1503_v33 = vpop.permute.xlu0 %1502 }
0x1771   :  { %vm1504_vm0 = vcmp.eq.s32.totalorder %v1503_v33, 1 }
0x1774   :  { %v1939_v48 = vpop.permute.xlu0 %1938 }
0x1775   :  { %vm1940_vm4 = vcmp.eq.s32.totalorder %v1939_v48, 1 }
0x17cc   :  { %v1926_v36 = vpop.permute.xlu1 %1925 }
0x17cd   :  { %v1928_v21 = vadd.f32 %v1926_v36, %v1918_v4 }
0x17cf   :  { %2859 = vtanh.f32 %v1928_v21 }
0x17d9   :  { %v2860_v13 = vpop.eup %2859 }
0x17da   :  { %1931 = vrot.lane.b32.xlu1 %v2860_v13, %s2864_s25 }
0x17dd   :  { %v419_v55 = vpop.permute.xlu0 %418  ;;  %v631_v24 = vpop.permute.xlu1 %630 }
0x17de   :  { %421 = vst.msk [vmem:[#allocation3] sm:$0xff] %vm208_vm2, %v419_v55  ;;  %vm632_vm13 = vcmp.eq.s32.totalorder %v631_v24, 1 }
0x17df   :  { %v633_v25 = vsel %vm632_vm13, %v3137_v20, 3.0  ;;  %v1505_v20 = vsel %vm1504_vm0, %v3294_v15, 3.0 }
0x17e0   :  { %635 = vrot.lane.b32.xlu1 %v633_v25, %s2865_s4 }
0x17e1   :  { %v849_v26 = vpop.permute.xlu1 %848 }
0x17e2   :  { %vm850_vm15 = vcmp.eq.s32.totalorder %v849_v26, 1 }
0x17e3   :  { %v851_v28 = vsel %vm850_vm15, %v3178_v3, 3.0 }
0x17e4   :  { %853 = vrot.lane.b32.xlu0 %v851_v28, %s2865_s4  ;;  %1071 = vrot.lane.b32.xlu1 %v1069_v27, %s2865_s4 }
0x17e5   :  { %v1285_v30 = vpop.permute.xlu1 %1284  ;;  %v1948_v32 = vld [vmem:[#allocation3] sm:$0xff] }
0x17e6   :  { %vm1286_vm1 = vcmp.eq.s32.totalorder %v1285_v30, 1  ;;  %2557 = vmatprep.mubr.msk.f32.mxu0 %vm208_vm2, %v1948_v32 }
0x17e7   :  { %v1287_v29 = vsel %vm1286_vm1, %v3260_v31, 3.0 }
0x17e8   :  { %1289 = vrot.lane.b32.xlu0 %v1287_v29, %s2865_s4  ;;  %1507 = vrot.lane.b32.xlu1 %v1505_v20, %s2865_s4 }
0x17e9   :  { %v1721_v46 = vpop.permute.xlu1 %1720 }
0x17ea   :  { %vm1722_vm3 = vcmp.eq.s32.totalorder %v1721_v46, 1 }
0x17eb   :  { %v1723_v3 = vsel %vm1722_vm3, %v3323_v45, 3.0 }
0x17ec   :  { %1725 = vrot.lane.b32.xlu0 %v1723_v3, %s2865_s4 }
0x184c   :  { %v1932_v34 = vpop.permute.xlu1 %1931 }
0x184d   :  { %v1934_v35 = vmul.f32 %v3334_v53, %v1932_v34 }
0x184f   :  { %v1941_v51 = vsel %vm1940_vm4, %v1934_v35, 3.0 }
0x1850   :  { %1943 = vrot.lane.b32.xlu1 %v1941_v51, %s2865_s4 }
0x1852   :  { %v636_v15 = vpop.permute.xlu1 %635 }
0x1853   :  { %639 = vst.msk [vmem:[#allocation3 + $0x8] sm:$0xff] %vm208_vm2, %v636_v15 }
0x1856   :  { %v854_v31 = vpop.permute.xlu0 %853  ;;  %v1072_v8 = vpop.permute.xlu1 %1071 }
0x1857   :  { %857 = vst.msk [vmem:[#allocation3 + $0x10] sm:$0xff] %vm208_vm2, %v854_v31  ;;  %1075 = vst.msk [vmem:[#allocation3 + $0x18] sm:$0xff] %vm208_vm2, %v1072_v8 }
0x185a   :  { %v1290_v37 = vpop.permute.xlu0 %1289  ;;  %v1508_v38 = vpop.permute.xlu1 %1507  ;;  %v1949_v40 = vld [vmem:[#allocation3 + $0x8] sm:$0xff] }
0x185b   :  { %1293 = vst.msk [vmem:[#allocation3 + $0x20] sm:$0xff] %vm208_vm2, %v1290_v37  ;;  %1511 = vst.msk [vmem:[#allocation3 + $0x28] sm:$0xff] %vm208_vm2, %v1508_v38  ;;  %2558 = vmatmul.mubr.msk.f32.vlgmr.msra.gmra.mrb[22].mxu0 %vm208_vm2, %v1949_v40 }
0x185e   :  { %v1726_v41 = vpop.permute.xlu0 %1725  ;;  %v1950_v42 = vld [vmem:[#allocation3 + $0x10] sm:$0xff]  ;;  %v1951_v12 = vld [vmem:[#allocation3 + $0x18] sm:$0xff] }
0x185f   :  { %1729 = vst.msk [vmem:[#allocation3 + $0x30] sm:$0xff] %vm208_vm2, %v1726_v41  ;;  %2560 = vmatprep.mubr.msk.f32.mxu0 %vm208_vm2, %v1950_v42 }
0x1860   :  { %2561 = vmatmul.mubr.msk.f32.gmra.mrb[24].mxu0 %vm208_vm2, %v1951_v12 }
0x1862   :  { %v1952_v43 = vld [vmem:[#allocation3 + $0x20] sm:$0xff]  ;;  %v1953_v45 = vld [vmem:[#allocation3 + $0x28] sm:$0xff] }
0x1863   :  { %2563 = vmatprep.mubr.msk.f32.mxu0 %vm208_vm2, %v1952_v43 }
0x1864   :  { %2564 = vmatmul.mubr.msk.f32.gmra.mrb[26].mxu0 %vm208_vm2, %v1953_v45 }
0x1866   :  { %v1954_v56 = vld [vmem:[#allocation3 + $0x30] sm:$0xff] }
0x1867   :  { %2566 = vmatprep.mubr.msk.f32.mxu0 %vm208_vm2, %v1954_v56 }
0x18c2   :  { %v1944_v47 = vpop.permute.xlu1 %1943 }
0x18c3   :  { %1947 = vst.msk [vmem:[#allocation3 + $0x38] sm:$0xff] %vm208_vm2, %v1944_v47 }
0x18ca   :  { %v1955_v49 = vld [vmem:[#allocation3 + $0x38] sm:$0xff] }
0x18cb   :  { %2567 = vmatmul.mubr.msk.f32.gmra.mrb[28].mxu0 %vm208_vm2, %v1955_v49 }
0x192e   :  { %v2559_v57 = vpop.f32.mrb[22].mxu0 }
0x192f   :  { %v2063_v52 = vadd.f32 %v2559_v57, %v2150_v50  ;;  %v2057_v58 = vpop.f32.mrb[23].mxu0 }
0x1930   :  { %v2058_v59 = vadd.f32 %v2150_v50, %v2057_v58 }
0x1931   :  { %2098 = vst.msk [vmem:[%s3429_s9 + $0x8] sm:$0xff] %vm2096_vm5, %v2063_v52 }
0x1932   :  { %2097 = vst.msk [vmem:[%s3429_s9] sm:$0xff] %vm2096_vm5, %v2058_v59 }
0x1933   :  { %v2562_v61 = vpop.f32.mrb[24].mxu0 }
0x1934   :  { %v2073_v62 = vadd.f32 %v2562_v61, %v2150_v50  ;;  %v2067_v63 = vpop.f32.mrb[25].mxu0 }
0x1935   :  { %v2068_v1 = vadd.f32 %v2150_v50, %v2067_v63 }
0x1936   :  { %2100 = vst.msk [vmem:[%s3429_s9 + $0x18] sm:$0xff] %vm2096_vm5, %v2073_v62 }
0x1937   :  { %2099 = vst.msk [vmem:[%s3429_s9 + $0x10] sm:$0xff] %vm2096_vm5, %v2068_v1  ;;  %v2565_v60 = vpop.f32.mrb[26].mxu0 }
0x1938   :  { %v2083_v2 = vadd.f32 %v2565_v60, %v2150_v50  ;;  %v2077_v5 = vpop.f32.mrb[27].mxu0 }
0x1939   :  { %v2078_v6 = vadd.f32 %v2150_v50, %v2077_v5 }
0x193a   :  { %2102 = vst.msk [vmem:[%s3429_s9 + $0x28] sm:$0xff] %vm2096_vm5, %v2083_v2 }
0x193b   :  { %2101 = vst.msk [vmem:[%s3429_s9 + $0x20] sm:$0xff] %vm2096_vm5, %v2078_v6 }
0x199e   :  { %v2568_v53 = vpop.f32.mrb[28].mxu0 }
0x199f   :  { %v2093_v7 = vadd.f32 %v2568_v53, %v2150_v50  ;;  %v2087_v9 = vpop.f32.mrb[29].mxu0 }
0x19a0   :  { %v2088_v10 = vadd.f32 %v2150_v50, %v2087_v9 }
0x19a1   :  { %2104 = vst.msk [vmem:[%s3429_s9 + $0x38] sm:$0xff] %vm2096_vm5, %v2093_v7 }
0x19a2   :  { %2103 = vst.msk [vmem:[%s3429_s9 + $0x30] sm:$0xff] %vm2096_vm5, %v2088_v10 }

</bundles_post_ra>
